<compile_context>
chip_gen: v7x
topology: tpu7x:2x2x1
jax: 0.10.0
libtpu: 0.0.40
codegen_flags: <defaults>
</compile_context>

<pallas_src>
import jax
import jax.numpy as jnp
from jax.experimental import pallas as pl
from jax.experimental.pallas import tpu as pltpu


# ------------------------- fused decoder kernel ------------------------------
def _make_decoder_kernel(num_layers, T, B, H):
    """All LSTM layers, all T timesteps, and the final Linear in one kernel."""
    L = num_layers
    H4 = 4 * H

    def kernel(*refs):
        onehot_ref = refs[0]                          # (T*B, Vin)  f32
        fused0_ref = refs[1]                          # (Vin, 4H) = emb @ W_ih0 (reordered)
        whh_refs = refs[2:2 + L]                      # (H, 4H) per layer
        wih_refs = refs[2 + L:2 + 2 * L - 1]          # (H, 4H), layers 1..L-1
        b_refs = refs[2 + 2 * L - 1:2 + 3 * L - 1]    # (1, 4H) per layer
        h0_ref, c0_ref, fcw_ref, fcb_ref, out_ref = refs[2 + 3 * L - 1:]

        # ---- recurrence-independent work, batched over all T timesteps ------
        # Embedding lookup + layer-0 input projection + bias: ONE matmul.
        ih0_all = (jnp.dot(onehot_ref[...], fused0_ref[...],
                           preferred_element_type=jnp.float32)
                   + b_refs[0][...])                  # (T*B, 4H)
        ih0_t = [ih0_all[t * B:(t + 1) * B, :] for t in range(T)]

        # Biases for layers >= 1, broadcast ONCE (not re-emitted per step).
        bias_b = [jnp.broadcast_to(b_refs[l][...], (B, H4)) for l in range(1, L)]

        h = [h0_ref[l] for l in range(L)]             # each (B, H)
        c = [c0_ref[l] for l in range(L)]
        h_top = []

        # ---- serial recurrence: only the state-dependent dots remain --------
        for t in range(T):
            x = None
            for l in range(L):
                if l == 0:
                    g = ih0_t[t] + jnp.dot(h[0], whh_refs[0][...],
                                           preferred_element_type=jnp.float32)
                else:
                    g = (jnp.dot(x, wih_refs[l - 1][...],
                                 preferred_element_type=jnp.float32)
                         + jnp.dot(h[l], whh_refs[l][...],
                                   preferred_element_type=jnp.float32)
                         + bias_b[l - 1])             # (B, 4H)  [i|f|o|g]
                sig = jax.nn.sigmoid(g[:, :3 * H])    # sigmoid on 3H lanes
                g_g = jnp.tanh(g[:, 3 * H:])          # tanh only on last H
                i_g = sig[:, 0 * H:1 * H]
                f_g = sig[:, 1 * H:2 * H]
                o_g = sig[:, 2 * H:3 * H]
                c_new = f_g * c[l] + i_g * g_g
                h_new = o_g * jnp.tanh(c_new)
                c[l] = c_new
                h[l] = h_new
                x = h_new
            h_top.append(x)

        # ---- hoisted final Linear: one matmul + one store -------------------
        hs = jnp.concatenate(h_top, axis=0)           # (T*B, H)
        out_ref[...] = (jnp.dot(hs, fcw_ref[...],
                                preferred_element_type=jnp.float32)
                        + fcb_ref[...])               # (T*B, Vout)

    return kernel


def decoder_forward(onehot, fused0, whh, wih_rest, bs, h0, c0, fc_w, fc_b,
                    *, T, B):
    """onehot: (T*B, Vin) f32 time-major one-hot tokens.  Returns (T,B,Vout)."""
    L = len(whh)
    H = h0.shape[-1]
    Vout = fc_w.shape[-1]

    kernel = _make_decoder_kernel(L, T, B, H)

    def vmem():
        return pl.BlockSpec(memory_space=pltpu.MemorySpace.VMEM)

    n_in = 2 + L + (L - 1) + L + 4
    out_flat = pl.pallas_call(
        kernel,
        out_shape=jax.ShapeDtypeStruct((T * B, Vout), jnp.float32),
        in_specs=[vmem() for _ in range(n_in)],
        out_specs=pl.BlockSpec(memory_space=pltpu.MemorySpace.VMEM),
    )(onehot, fused0, *whh, *wih_rest, *bs, h0, c0, fc_w, fc_b)
    return out_flat.reshape(T, B, Vout)


# ------------------------------ weight prep ----------------------------------
def _reorder_gates(w, H):
    """Gate columns [i | f | g | o] (canonical) -> [i | f | o | g] (kernel)."""
    return jnp.concatenate([w[..., 0 * H:1 * H], w[..., 1 * H:2 * H],
                            w[..., 3 * H:4 * H], w[..., 2 * H:3 * H]], axis=-1)


# --------------------------------- Decoder -----------------------------------
class Decoder:
    def __init__(self, input_dim, emb_dim, cell_dim, num_layers, key):
        self.input_dim = input_dim
        self.emb_dim = emb_dim
        self.cell_dim = cell_dim
        self.num_layers = num_layers

        ks = jax.random.split(key, 2 + 3 * num_layers)
        scale = 0.1
        # Embedding table (input_dim, emb_dim)
        self.emb_table = scale * jax.random.normal(
            ks[0], (input_dim, emb_dim), jnp.float32)
        # Per-layer LSTM weights, canonical gate order [i|f|g|o];
        # bias is b_ih + b_hh combined.
        self.w_ih, self.w_hh, self.b = [], [], []
        for l in range(num_layers):
            in_dim = emb_dim if l == 0 else cell_dim
            self.w_ih.append(scale * jax.random.normal(
                ks[2 + 3 * l], (in_dim, 4 * cell_dim), jnp.float32))
            self.w_hh.append(scale * jax.random.normal(
                ks[3 + 3 * l], (cell_dim, 4 * cell_dim), jnp.float32))
            self.b.append(scale * jax.random.normal(
                ks[4 + 3 * l], (1, 4 * cell_dim), jnp.float32))
        # Final Linear (cell_dim -> input_dim)
        self.fc_w = scale * jax.random.normal(
            ks[1], (cell_dim, input_dim), jnp.float32)
        self.fc_b = jnp.zeros((1, input_dim), jnp.float32)

        # Kernel-ready params: gate-reordered, with the embedding fused into
        # layer-0's input projection (one-hot @ fused0 == emb[tok] @ W_ih0).
        H = cell_dim
        self._fused0 = self.emb_table @ _reorder_gates(self.w_ih[0], H)  # (Vin, 4H)
        self._whh_r = [_reorder_gates(w, H) for w in self.w_hh]
        self._wih_r = [_reorder_gates(w, H) for w in self.w_ih[1:]]
        self._b_r = [_reorder_gates(b, H) for b in self.b]

    def __call__(self, text, h, c):
        """text: (B, T) int32; h, c: (num_layers, B, cell_dim) f32.
        Returns (T, B, input_dim) f32 — same as PyTorch permute(1,0,2) + fc."""
        B, T = text.shape
        flat = jnp.transpose(text, (1, 0)).reshape(T * B).astype(jnp.int32)
        # TODO(synk): out-of-range token ids yield a zero embedding (no error),
        # unlike torch.nn.Embedding which would raise.
        onehot = jax.nn.one_hot(flat, self.input_dim, dtype=jnp.float32)
        return decoder_forward(onehot, self._fused0, self._whh_r, self._wih_r,
                               self._b_r, h, c, self.fc_w, self.fc_b, T=T, B=B)


# ---------------------------- pure-JAX reference ------------------------------
def decoder_reference(text, emb_table, w_ih, w_hh, bs, h0, c0, fc_w, fc_b):
    emb = emb_table[text]                         # (B, T, E)
    x = jnp.transpose(emb, (1, 0, 2))             # (T, B, E)
    L = len(w_ih)
    H = h0.shape[-1]
    h = [h0[l] for l in range(L)]
    c = [c0[l] for l in range(L)]
    outs = []
    for t in range(x.shape[0]):
        x_t = x[t]
        for l in range(L):
            g = x_t @ w_ih[l] + h[l] @ w_hh[l] + bs[l]   # [i|f|g|o]
            i_g = jax.nn.sigmoid(g[:, 0 * H:1 * H])
            f_g = jax.nn.sigmoid(g[:, 1 * H:2 * H])
            g_g = jnp.tanh(g[:, 2 * H:3 * H])
            o_g = jax.nn.sigmoid(g[:, 3 * H:4 * H])
            c[l] = f_g * c[l] + i_g * g_g
            h[l] = o_g * jnp.tanh(c[l])
            x_t = h[l]
        outs.append(x_t @ fc_w + fc_b)
    return jnp.stack(outs, axis=0)


if __name__ == "__main__":
    INPUT_DIM = 16   # vocab size
    EMB_DIM = 32
    CELL_DIM = 32
    NUM_LAYERS = 2
    B, T = 2, 8

    key = jax.random.PRNGKey(0)
    k_params, k_text, k_h, k_c = jax.random.split(key, 4)

    decoder = Decoder(INPUT_DIM, EMB_DIM, CELL_DIM, NUM_LAYERS, k_params)

    text = jax.random.randint(k_text, (B, T), 0, INPUT_DIM, dtype=jnp.int32)
    h0 = 0.1 * jax.random.normal(k_h, (NUM_LAYERS, B, CELL_DIM), jnp.float32)
    c0 = 0.1 * jax.random.normal(k_c, (NUM_LAYERS, B, CELL_DIM), jnp.float32)

    out = decoder(text, h0, c0)
    out = jax.block_until_ready(out)
    assert out.shape == (T, B, INPUT_DIM), out.shape

    ref = decoder_reference(text, decoder.emb_table, decoder.w_ih, decoder.w_hh,
                            decoder.b, h0, c0, decoder.fc_w, decoder.fc_b)
    assert bool(jnp.allclose(out, ref, rtol=2e-3, atol=2e-3)), \
        float(jnp.max(jnp.abs(out - ref)))

    print("KERNEL_OK")
</pallas_src>

<mosaic_0001>
module attributes {stable_mosaic.version = 11 : i64} {
  func.func @kernel(%arg0: memref<16x16xf32, #tpu.memory_space<vmem>>, %arg1: memref<16x128xf32, #tpu.memory_space<vmem>>, %arg2: memref<32x128xf32, #tpu.memory_space<vmem>>, %arg3: memref<32x128xf32, #tpu.memory_space<vmem>>, %arg4: memref<32x128xf32, #tpu.memory_space<vmem>>, %arg5: memref<1x128xf32, #tpu.memory_space<vmem>>, %arg6: memref<1x128xf32, #tpu.memory_space<vmem>>, %arg7: memref<2x2x32xf32, #tpu.memory_space<vmem>>, %arg8: memref<2x2x32xf32, #tpu.memory_space<vmem>>, %arg9: memref<32x16xf32, #tpu.memory_space<vmem>>, %arg10: memref<1x16xf32, #tpu.memory_space<vmem>>, %arg11: memref<16x16xf32, #tpu.memory_space<vmem>>) attributes {dimension_semantics = [], scalar_prefetch = 0 : i64, scratch_operands = 0 : i64, tpu.core_type = #tpu.core_type<tc>} {
    %c0 = arith.constant 0 : index
    %c0_0 = arith.constant 0 : index
    %0 = vector.load %arg0[%c0, %c0_0] : memref<16x16xf32, #tpu.memory_space<vmem>>, vector<16x16xf32>
    %c0_1 = arith.constant 0 : index
    %c0_2 = arith.constant 0 : index
    %1 = vector.load %arg1[%c0_1, %c0_2] : memref<16x128xf32, #tpu.memory_space<vmem>>, vector<16x128xf32>
    %cst = arith.constant dense<0.000000e+00> : vector<16x128xf32>
    %2 = tpu.matmul %0, %1, %cst {dimension_numbers = #tpu.dot_dimension_numbers<[1], [0], [0], [1], [0, 0, 1, 1], [], []>} : vector<16x16xf32>, vector<16x128xf32>, vector<16x128xf32> -> vector<16x128xf32>
    %c0_3 = arith.constant 0 : index
    %c0_4 = arith.constant 0 : index
    %3 = vector.load %arg5[%c0_3, %c0_4] : memref<1x128xf32, #tpu.memory_space<vmem>>, vector<1x128xf32>
    %4 = vector.broadcast %3 : vector<1x128xf32> to vector<16x128xf32>
    %5 = arith.addf %2, %4 : vector<16x128xf32>
    %6 = vector.extract_strided_slice %5 {offsets = [0, 0], sizes = [2, 128], strides = [1, 1]} : vector<16x128xf32> to vector<2x128xf32>
    %7 = vector.extract_strided_slice %5 {offsets = [2, 0], sizes = [2, 128], strides = [1, 1]} : vector<16x128xf32> to vector<2x128xf32>
    %8 = vector.extract_strided_slice %5 {offsets = [4, 0], sizes = [2, 128], strides = [1, 1]} : vector<16x128xf32> to vector<2x128xf32>
    %9 = vector.extract_strided_slice %5 {offsets = [6, 0], sizes = [2, 128], strides = [1, 1]} : vector<16x128xf32> to vector<2x128xf32>
    %10 = vector.extract_strided_slice %5 {offsets = [8, 0], sizes = [2, 128], strides = [1, 1]} : vector<16x128xf32> to vector<2x128xf32>
    %11 = vector.extract_strided_slice %5 {offsets = [10, 0], sizes = [2, 128], strides = [1, 1]} : vector<16x128xf32> to vector<2x128xf32>
    %12 = vector.extract_strided_slice %5 {offsets = [12, 0], sizes = [2, 128], strides = [1, 1]} : vector<16x128xf32> to vector<2x128xf32>
    %13 = vector.extract_strided_slice %5 {offsets = [14, 0], sizes = [2, 128], strides = [1, 1]} : vector<16x128xf32> to vector<2x128xf32>
    %c0_5 = arith.constant 0 : index
    %c0_6 = arith.constant 0 : index
    %14 = vector.load %arg6[%c0_5, %c0_6] : memref<1x128xf32, #tpu.memory_space<vmem>>, vector<1x128xf32>
    %15 = vector.shape_cast %14 : vector<1x128xf32> to vector<1x128xf32>
    %16 = vector.broadcast %15 : vector<1x128xf32> to vector<2x128xf32>
    %c0_7 = arith.constant 0 : index
    %c0_8 = arith.constant 0 : index
    %c0_9 = arith.constant 0 : index
    %17 = vector.load %arg7[%c0_7, %c0_8, %c0_9] : memref<2x2x32xf32, #tpu.memory_space<vmem>>, vector<1x2x32xf32>
    %18 = vector.shape_cast %17 : vector<1x2x32xf32> to vector<2x32xf32>
    %c1 = arith.constant 1 : index
    %c0_10 = arith.constant 0 : index
    %c0_11 = arith.constant 0 : index
    %19 = vector.load %arg7[%c1, %c0_10, %c0_11] : memref<2x2x32xf32, #tpu.memory_space<vmem>>, vector<1x2x32xf32>
    %20 = vector.shape_cast %19 : vector<1x2x32xf32> to vector<2x32xf32>
    %c0_12 = arith.constant 0 : index
    %c0_13 = arith.constant 0 : index
    %c0_14 = arith.constant 0 : index
    %21 = vector.load %arg8[%c0_12, %c0_13, %c0_14] : memref<2x2x32xf32, #tpu.memory_space<vmem>>, vector<1x2x32xf32>
    %22 = vector.shape_cast %21 : vector<1x2x32xf32> to vector<2x32xf32>
    %c1_15 = arith.constant 1 : index
    %c0_16 = arith.constant 0 : index
    %c0_17 = arith.constant 0 : index
    %23 = vector.load %arg8[%c1_15, %c0_16, %c0_17] : memref<2x2x32xf32, #tpu.memory_space<vmem>>, vector<1x2x32xf32>
    %24 = vector.shape_cast %23 : vector<1x2x32xf32> to vector<2x32xf32>
    %c0_18 = arith.constant 0 : index
    %c0_19 = arith.constant 0 : index
    %25 = vector.load %arg2[%c0_18, %c0_19] : memref<32x128xf32, #tpu.memory_space<vmem>>, vector<32x128xf32>
    %cst_20 = arith.constant dense<0.000000e+00> : vector<2x128xf32>
    %26 = tpu.matmul %18, %25, %cst_20 {dimension_numbers = #tpu.dot_dimension_numbers<[1], [0], [0], [1], [0, 0, 1, 1], [], []>} : vector<2x32xf32>, vector<32x128xf32>, vector<2x128xf32> -> vector<2x128xf32>
    %27 = arith.addf %6, %26 : vector<2x128xf32>
    %28 = vector.extract_strided_slice %27 {offsets = [0, 0], sizes = [2, 96], strides = [1, 1]} : vector<2x128xf32> to vector<2x96xf32>
    %29 = arith.negf %28 : vector<2x96xf32>
    %30 = math.exp %29 : vector<2x96xf32>
    %cst_21 = arith.constant 1.000000e+00 : f32
    %31 = vector.broadcast %cst_21 : f32 to vector<2x96xf32>
    %32 = arith.addf %31, %30 : vector<2x96xf32>
    %33 = arith.divf %31, %32 : vector<2x96xf32>
    %34 = vector.extract_strided_slice %27 {offsets = [0, 96], sizes = [2, 32], strides = [1, 1]} : vector<2x128xf32> to vector<2x32xf32>
    %35 = math.tanh %34 : vector<2x32xf32>
    %36 = vector.extract_strided_slice %33 {offsets = [0, 0], sizes = [2, 32], strides = [1, 1]} : vector<2x96xf32> to vector<2x32xf32>
    %37 = vector.extract_strided_slice %33 {offsets = [0, 32], sizes = [2, 32], strides = [1, 1]} : vector<2x96xf32> to vector<2x32xf32>
    %38 = vector.extract_strided_slice %33 {offsets = [0, 64], sizes = [2, 32], strides = [1, 1]} : vector<2x96xf32> to vector<2x32xf32>
    %39 = arith.mulf %37, %22 : vector<2x32xf32>
    %40 = arith.mulf %36, %35 : vector<2x32xf32>
    %41 = arith.addf %39, %40 : vector<2x32xf32>
    %42 = math.tanh %41 : vector<2x32xf32>
    %43 = arith.mulf %38, %42 : vector<2x32xf32>
    %c0_22 = arith.constant 0 : index
    %c0_23 = arith.constant 0 : index
    %44 = vector.load %arg4[%c0_22, %c0_23] : memref<32x128xf32, #tpu.memory_space<vmem>>, vector<32x128xf32>
    %cst_24 = arith.constant dense<0.000000e+00> : vector<2x128xf32>
    %45 = tpu.matmul %43, %44, %cst_24 {dimension_numbers = #tpu.dot_dimension_numbers<[1], [0], [0], [1], [0, 0, 1, 1], [], []>} : vector<2x32xf32>, vector<32x128xf32>, vector<2x128xf32> -> vector<2x128xf32>
    %c0_25 = arith.constant 0 : index
    %c0_26 = arith.constant 0 : index
    %46 = vector.load %arg3[%c0_25, %c0_26] : memref<32x128xf32, #tpu.memory_space<vmem>>, vector<32x128xf32>
    %cst_27 = arith.constant dense<0.000000e+00> : vector<2x128xf32>
    %47 = tpu.matmul %20, %46, %cst_27 {dimension_numbers = #tpu.dot_dimension_numbers<[1], [0], [0], [1], [0, 0, 1, 1], [], []>} : vector<2x32xf32>, vector<32x128xf32>, vector<2x128xf32> -> vector<2x128xf32>
    %48 = arith.addf %45, %47 : vector<2x128xf32>
    %49 = arith.addf %48, %16 : vector<2x128xf32>
    %50 = vector.extract_strided_slice %49 {offsets = [0, 0], sizes = [2, 96], strides = [1, 1]} : vector<2x128xf32> to vector<2x96xf32>
    %51 = arith.negf %50 : vector<2x96xf32>
    %52 = math.exp %51 : vector<2x96xf32>
    %cst_28 = arith.constant 1.000000e+00 : f32
    %53 = vector.broadcast %cst_28 : f32 to vector<2x96xf32>
    %54 = arith.addf %53, %52 : vector<2x96xf32>
    %55 = arith.divf %53, %54 : vector<2x96xf32>
    %56 = vector.extract_strided_slice %49 {offsets = [0, 96], sizes = [2, 32], strides = [1, 1]} : vector<2x128xf32> to vector<2x32xf32>
    %57 = math.tanh %56 : vector<2x32xf32>
    %58 = vector.extract_strided_slice %55 {offsets = [0, 0], sizes = [2, 32], strides = [1, 1]} : vector<2x96xf32> to vector<2x32xf32>
    %59 = vector.extract_strided_slice %55 {offsets = [0, 32], sizes = [2, 32], strides = [1, 1]} : vector<2x96xf32> to vector<2x32xf32>
    %60 = vector.extract_strided_slice %55 {offsets = [0, 64], sizes = [2, 32], strides = [1, 1]} : vector<2x96xf32> to vector<2x32xf32>
    %61 = arith.mulf %59, %24 : vector<2x32xf32>
    %62 = arith.mulf %58, %57 : vector<2x32xf32>
    %63 = arith.addf %61, %62 : vector<2x32xf32>
    %64 = math.tanh %63 : vector<2x32xf32>
    %65 = arith.mulf %60, %64 : vector<2x32xf32>
    %c0_29 = arith.constant 0 : index
    %c0_30 = arith.constant 0 : index
    %66 = vector.load %arg2[%c0_29, %c0_30] : memref<32x128xf32, #tpu.memory_space<vmem>>, vector<32x128xf32>
    %cst_31 = arith.constant dense<0.000000e+00> : vector<2x128xf32>
    %67 = tpu.matmul %43, %66, %cst_31 {dimension_numbers = #tpu.dot_dimension_numbers<[1], [0], [0], [1], [0, 0, 1, 1], [], []>} : vector<2x32xf32>, vector<32x128xf32>, vector<2x128xf32> -> vector<2x128xf32>
    %68 = arith.addf %7, %67 : vector<2x128xf32>
    %69 = vector.extract_strided_slice %68 {offsets = [0, 0], sizes = [2, 96], strides = [1, 1]} : vector<2x128xf32> to vector<2x96xf32>
    %70 = arith.negf %69 : vector<2x96xf32>
    %71 = math.exp %70 : vector<2x96xf32>
    %cst_32 = arith.constant 1.000000e+00 : f32
    %72 = vector.broadcast %cst_32 : f32 to vector<2x96xf32>
    %73 = arith.addf %72, %71 : vector<2x96xf32>
    %74 = arith.divf %72, %73 : vector<2x96xf32>
    %75 = vector.extract_strided_slice %68 {offsets = [0, 96], sizes = [2, 32], strides = [1, 1]} : vector<2x128xf32> to vector<2x32xf32>
    %76 = math.tanh %75 : vector<2x32xf32>
    %77 = vector.extract_strided_slice %74 {offsets = [0, 0], sizes = [2, 32], strides = [1, 1]} : vector<2x96xf32> to vector<2x32xf32>
    %78 = vector.extract_strided_slice %74 {offsets = [0, 32], sizes = [2, 32], strides = [1, 1]} : vector<2x96xf32> to vector<2x32xf32>
    %79 = vector.extract_strided_slice %74 {offsets = [0, 64], sizes = [2, 32], strides = [1, 1]} : vector<2x96xf32> to vector<2x32xf32>
    %80 = arith.mulf %78, %41 : vector<2x32xf32>
    %81 = arith.mulf %77, %76 : vector<2x32xf32>
    %82 = arith.addf %80, %81 : vector<2x32xf32>
    %83 = math.tanh %82 : vector<2x32xf32>
    %84 = arith.mulf %79, %83 : vector<2x32xf32>
    %c0_33 = arith.constant 0 : index
    %c0_34 = arith.constant 0 : index
    %85 = vector.load %arg4[%c0_33, %c0_34] : memref<32x128xf32, #tpu.memory_space<vmem>>, vector<32x128xf32>
    %cst_35 = arith.constant dense<0.000000e+00> : vector<2x128xf32>
    %86 = tpu.matmul %84, %85, %cst_35 {dimension_numbers = #tpu.dot_dimension_numbers<[1], [0], [0], [1], [0, 0, 1, 1], [], []>} : vector<2x32xf32>, vector<32x128xf32>, vector<2x128xf32> -> vector<2x128xf32>
    %c0_36 = arith.constant 0 : index
    %c0_37 = arith.constant 0 : index
    %87 = vector.load %arg3[%c0_36, %c0_37] : memref<32x128xf32, #tpu.memory_space<vmem>>, vector<32x128xf32>
    %cst_38 = arith.constant dense<0.000000e+00> : vector<2x128xf32>
    %88 = tpu.matmul %65, %87, %cst_38 {dimension_numbers = #tpu.dot_dimension_numbers<[1], [0], [0], [1], [0, 0, 1, 1], [], []>} : vector<2x32xf32>, vector<32x128xf32>, vector<2x128xf32> -> vector<2x128xf32>
    %89 = arith.addf %86, %88 : vector<2x128xf32>
    %90 = arith.addf %89, %16 : vector<2x128xf32>
    %91 = vector.extract_strided_slice %90 {offsets = [0, 0], sizes = [2, 96], strides = [1, 1]} : vector<2x128xf32> to vector<2x96xf32>
    %92 = arith.negf %91 : vector<2x96xf32>
    %93 = math.exp %92 : vector<2x96xf32>
    %cst_39 = arith.constant 1.000000e+00 : f32
    %94 = vector.broadcast %cst_39 : f32 to vector<2x96xf32>
    %95 = arith.addf %94, %93 : vector<2x96xf32>
    %96 = arith.divf %94, %95 : vector<2x96xf32>
    %97 = vector.extract_strided_slice %90 {offsets = [0, 96], sizes = [2, 32], strides = [1, 1]} : vector<2x128xf32> to vector<2x32xf32>
    %98 = math.tanh %97 : vector<2x32xf32>
    %99 = vector.extract_strided_slice %96 {offsets = [0, 0], sizes = [2, 32], strides = [1, 1]} : vector<2x96xf32> to vector<2x32xf32>
    %100 = vector.extract_strided_slice %96 {offsets = [0, 32], sizes = [2, 32], strides = [1, 1]} : vector<2x96xf32> to vector<2x32xf32>
    %101 = vector.extract_strided_slice %96 {offsets = [0, 64], sizes = [2, 32], strides = [1, 1]} : vector<2x96xf32> to vector<2x32xf32>
    %102 = arith.mulf %100, %63 : vector<2x32xf32>
    %103 = arith.mulf %99, %98 : vector<2x32xf32>
    %104 = arith.addf %102, %103 : vector<2x32xf32>
    %105 = math.tanh %104 : vector<2x32xf32>
    %106 = arith.mulf %101, %105 : vector<2x32xf32>
    %c0_40 = arith.constant 0 : index
    %c0_41 = arith.constant 0 : index
    %107 = vector.load %arg2[%c0_40, %c0_41] : memref<32x128xf32, #tpu.memory_space<vmem>>, vector<32x128xf32>
    %cst_42 = arith.constant dense<0.000000e+00> : vector<2x128xf32>
    %108 = tpu.matmul %84, %107, %cst_42 {dimension_numbers = #tpu.dot_dimension_numbers<[1], [0], [0], [1], [0, 0, 1, 1], [], []>} : vector<2x32xf32>, vector<32x128xf32>, vector<2x128xf32> -> vector<2x128xf32>
    %109 = arith.addf %8, %108 : vector<2x128xf32>
    %110 = vector.extract_strided_slice %109 {offsets = [0, 0], sizes = [2, 96], strides = [1, 1]} : vector<2x128xf32> to vector<2x96xf32>
    %111 = arith.negf %110 : vector<2x96xf32>
    %112 = math.exp %111 : vector<2x96xf32>
    %cst_43 = arith.constant 1.000000e+00 : f32
    %113 = vector.broadcast %cst_43 : f32 to vector<2x96xf32>
    %114 = arith.addf %113, %112 : vector<2x96xf32>
    %115 = arith.divf %113, %114 : vector<2x96xf32>
    %116 = vector.extract_strided_slice %109 {offsets = [0, 96], sizes = [2, 32], strides = [1, 1]} : vector<2x128xf32> to vector<2x32xf32>
    %117 = math.tanh %116 : vector<2x32xf32>
    %118 = vector.extract_strided_slice %115 {offsets = [0, 0], sizes = [2, 32], strides = [1, 1]} : vector<2x96xf32> to vector<2x32xf32>
    %119 = vector.extract_strided_slice %115 {offsets = [0, 32], sizes = [2, 32], strides = [1, 1]} : vector<2x96xf32> to vector<2x32xf32>
    %120 = vector.extract_strided_slice %115 {offsets = [0, 64], sizes = [2, 32], strides = [1, 1]} : vector<2x96xf32> to vector<2x32xf32>
    %121 = arith.mulf %119, %82 : vector<2x32xf32>
    %122 = arith.mulf %118, %117 : vector<2x32xf32>
    %123 = arith.addf %121, %122 : vector<2x32xf32>
    %124 = math.tanh %123 : vector<2x32xf32>
    %125 = arith.mulf %120, %124 : vector<2x32xf32>
    %c0_44 = arith.constant 0 : index
    %c0_45 = arith.constant 0 : index
    %126 = vector.load %arg4[%c0_44, %c0_45] : memref<32x128xf32, #tpu.memory_space<vmem>>, vector<32x128xf32>
    %cst_46 = arith.constant dense<0.000000e+00> : vector<2x128xf32>
    %127 = tpu.matmul %125, %126, %cst_46 {dimension_numbers = #tpu.dot_dimension_numbers<[1], [0], [0], [1], [0, 0, 1, 1], [], []>} : vector<2x32xf32>, vector<32x128xf32>, vector<2x128xf32> -> vector<2x128xf32>
    %c0_47 = arith.constant 0 : index
    %c0_48 = arith.constant 0 : index
    %128 = vector.load %arg3[%c0_47, %c0_48] : memref<32x128xf32, #tpu.memory_space<vmem>>, vector<32x128xf32>
    %cst_49 = arith.constant dense<0.000000e+00> : vector<2x128xf32>
    %129 = tpu.matmul %106, %128, %cst_49 {dimension_numbers = #tpu.dot_dimension_numbers<[1], [0], [0], [1], [0, 0, 1, 1], [], []>} : vector<2x32xf32>, vector<32x128xf32>, vector<2x128xf32> -> vector<2x128xf32>
    %130 = arith.addf %127, %129 : vector<2x128xf32>
    %131 = arith.addf %130, %16 : vector<2x128xf32>
    %132 = vector.extract_strided_slice %131 {offsets = [0, 0], sizes = [2, 96], strides = [1, 1]} : vector<2x128xf32> to vector<2x96xf32>
    %133 = arith.negf %132 : vector<2x96xf32>
    %134 = math.exp %133 : vector<2x96xf32>
    %cst_50 = arith.constant 1.000000e+00 : f32
    %135 = vector.broadcast %cst_50 : f32 to vector<2x96xf32>
    %136 = arith.addf %135, %134 : vector<2x96xf32>
    %137 = arith.divf %135, %136 : vector<2x96xf32>
    %138 = vector.extract_strided_slice %131 {offsets = [0, 96], sizes = [2, 32], strides = [1, 1]} : vector<2x128xf32> to vector<2x32xf32>
    %139 = math.tanh %138 : vector<2x32xf32>
    %140 = vector.extract_strided_slice %137 {offsets = [0, 0], sizes = [2, 32], strides = [1, 1]} : vector<2x96xf32> to vector<2x32xf32>
    %141 = vector.extract_strided_slice %137 {offsets = [0, 32], sizes = [2, 32], strides = [1, 1]} : vector<2x96xf32> to vector<2x32xf32>
    %142 = vector.extract_strided_slice %137 {offsets = [0, 64], sizes = [2, 32], strides = [1, 1]} : vector<2x96xf32> to vector<2x32xf32>
    %143 = arith.mulf %141, %104 : vector<2x32xf32>
    %144 = arith.mulf %140, %139 : vector<2x32xf32>
    %145 = arith.addf %143, %144 : vector<2x32xf32>
    %146 = math.tanh %145 : vector<2x32xf32>
    %147 = arith.mulf %142, %146 : vector<2x32xf32>
    %c0_51 = arith.constant 0 : index
    %c0_52 = arith.constant 0 : index
    %148 = vector.load %arg2[%c0_51, %c0_52] : memref<32x128xf32, #tpu.memory_space<vmem>>, vector<32x128xf32>
    %cst_53 = arith.constant dense<0.000000e+00> : vector<2x128xf32>
    %149 = tpu.matmul %125, %148, %cst_53 {dimension_numbers = #tpu.dot_dimension_numbers<[1], [0], [0], [1], [0, 0, 1, 1], [], []>} : vector<2x32xf32>, vector<32x128xf32>, vector<2x128xf32> -> vector<2x128xf32>
    %150 = arith.addf %9, %149 : vector<2x128xf32>
    %151 = vector.extract_strided_slice %150 {offsets = [0, 0], sizes = [2, 96], strides = [1, 1]} : vector<2x128xf32> to vector<2x96xf32>
    %152 = arith.negf %151 : vector<2x96xf32>
    %153 = math.exp %152 : vector<2x96xf32>
    %cst_54 = arith.constant 1.000000e+00 : f32
    %154 = vector.broadcast %cst_54 : f32 to vector<2x96xf32>
    %155 = arith.addf %154, %153 : vector<2x96xf32>
    %156 = arith.divf %154, %155 : vector<2x96xf32>
    %157 = vector.extract_strided_slice %150 {offsets = [0, 96], sizes = [2, 32], strides = [1, 1]} : vector<2x128xf32> to vector<2x32xf32>
    %158 = math.tanh %157 : vector<2x32xf32>
    %159 = vector.extract_strided_slice %156 {offsets = [0, 0], sizes = [2, 32], strides = [1, 1]} : vector<2x96xf32> to vector<2x32xf32>
    %160 = vector.extract_strided_slice %156 {offsets = [0, 32], sizes = [2, 32], strides = [1, 1]} : vector<2x96xf32> to vector<2x32xf32>
    %161 = vector.extract_strided_slice %156 {offsets = [0, 64], sizes = [2, 32], strides = [1, 1]} : vector<2x96xf32> to vector<2x32xf32>
    %162 = arith.mulf %160, %123 : vector<2x32xf32>
    %163 = arith.mulf %159, %158 : vector<2x32xf32>
    %164 = arith.addf %162, %163 : vector<2x32xf32>
    %165 = math.tanh %164 : vector<2x32xf32>
    %166 = arith.mulf %161, %165 : vector<2x32xf32>
    %c0_55 = arith.constant 0 : index
    %c0_56 = arith.constant 0 : index
    %167 = vector.load %arg4[%c0_55, %c0_56] : memref<32x128xf32, #tpu.memory_space<vmem>>, vector<32x128xf32>
    %cst_57 = arith.constant dense<0.000000e+00> : vector<2x128xf32>
    %168 = tpu.matmul %166, %167, %cst_57 {dimension_numbers = #tpu.dot_dimension_numbers<[1], [0], [0], [1], [0, 0, 1, 1], [], []>} : vector<2x32xf32>, vector<32x128xf32>, vector<2x128xf32> -> vector<2x128xf32>
    %c0_58 = arith.constant 0 : index
    %c0_59 = arith.constant 0 : index
    %169 = vector.load %arg3[%c0_58, %c0_59] : memref<32x128xf32, #tpu.memory_space<vmem>>, vector<32x128xf32>
    %cst_60 = arith.constant dense<0.000000e+00> : vector<2x128xf32>
    %170 = tpu.matmul %147, %169, %cst_60 {dimension_numbers = #tpu.dot_dimension_numbers<[1], [0], [0], [1], [0, 0, 1, 1], [], []>} : vector<2x32xf32>, vector<32x128xf32>, vector<2x128xf32> -> vector<2x128xf32>
    %171 = arith.addf %168, %170 : vector<2x128xf32>
    %172 = arith.addf %171, %16 : vector<2x128xf32>
    %173 = vector.extract_strided_slice %172 {offsets = [0, 0], sizes = [2, 96], strides = [1, 1]} : vector<2x128xf32> to vector<2x96xf32>
    %174 = arith.negf %173 : vector<2x96xf32>
    %175 = math.exp %174 : vector<2x96xf32>
    %cst_61 = arith.constant 1.000000e+00 : f32
    %176 = vector.broadcast %cst_61 : f32 to vector<2x96xf32>
    %177 = arith.addf %176, %175 : vector<2x96xf32>
    %178 = arith.divf %176, %177 : vector<2x96xf32>
    %179 = vector.extract_strided_slice %172 {offsets = [0, 96], sizes = [2, 32], strides = [1, 1]} : vector<2x128xf32> to vector<2x32xf32>
    %180 = math.tanh %179 : vector<2x32xf32>
    %181 = vector.extract_strided_slice %178 {offsets = [0, 0], sizes = [2, 32], strides = [1, 1]} : vector<2x96xf32> to vector<2x32xf32>
    %182 = vector.extract_strided_slice %178 {offsets = [0, 32], sizes = [2, 32], strides = [1, 1]} : vector<2x96xf32> to vector<2x32xf32>
    %183 = vector.extract_strided_slice %178 {offsets = [0, 64], sizes = [2, 32], strides = [1, 1]} : vector<2x96xf32> to vector<2x32xf32>
    %184 = arith.mulf %182, %145 : vector<2x32xf32>
    %185 = arith.mulf %181, %180 : vector<2x32xf32>
    %186 = arith.addf %184, %185 : vector<2x32xf32>
    %187 = math.tanh %186 : vector<2x32xf32>
    %188 = arith.mulf %183, %187 : vector<2x32xf32>
    %c0_62 = arith.constant 0 : index
    %c0_63 = arith.constant 0 : index
    %189 = vector.load %arg2[%c0_62, %c0_63] : memref<32x128xf32, #tpu.memory_space<vmem>>, vector<32x128xf32>
    %cst_64 = arith.constant dense<0.000000e+00> : vector<2x128xf32>
    %190 = tpu.matmul %166, %189, %cst_64 {dimension_numbers = #tpu.dot_dimension_numbers<[1], [0], [0], [1], [0, 0, 1, 1], [], []>} : vector<2x32xf32>, vector<32x128xf32>, vector<2x128xf32> -> vector<2x128xf32>
    %191 = arith.addf %10, %190 : vector<2x128xf32>
    %192 = vector.extract_strided_slice %191 {offsets = [0, 0], sizes = [2, 96], strides = [1, 1]} : vector<2x128xf32> to vector<2x96xf32>
    %193 = arith.negf %192 : vector<2x96xf32>
    %194 = math.exp %193 : vector<2x96xf32>
    %cst_65 = arith.constant 1.000000e+00 : f32
    %195 = vector.broadcast %cst_65 : f32 to vector<2x96xf32>
    %196 = arith.addf %195, %194 : vector<2x96xf32>
    %197 = arith.divf %195, %196 : vector<2x96xf32>
    %198 = vector.extract_strided_slice %191 {offsets = [0, 96], sizes = [2, 32], strides = [1, 1]} : vector<2x128xf32> to vector<2x32xf32>
    %199 = math.tanh %198 : vector<2x32xf32>
    %200 = vector.extract_strided_slice %197 {offsets = [0, 0], sizes = [2, 32], strides = [1, 1]} : vector<2x96xf32> to vector<2x32xf32>
    %201 = vector.extract_strided_slice %197 {offsets = [0, 32], sizes = [2, 32], strides = [1, 1]} : vector<2x96xf32> to vector<2x32xf32>
    %202 = vector.extract_strided_slice %197 {offsets = [0, 64], sizes = [2, 32], strides = [1, 1]} : vector<2x96xf32> to vector<2x32xf32>
    %203 = arith.mulf %201, %164 : vector<2x32xf32>
    %204 = arith.mulf %200, %199 : vector<2x32xf32>
    %205 = arith.addf %203, %204 : vector<2x32xf32>
    %206 = math.tanh %205 : vector<2x32xf32>
    %207 = arith.mulf %202, %206 : vector<2x32xf32>
    %c0_66 = arith.constant 0 : index
    %c0_67 = arith.constant 0 : index
    %208 = vector.load %arg4[%c0_66, %c0_67] : memref<32x128xf32, #tpu.memory_space<vmem>>, vector<32x128xf32>
    %cst_68 = arith.constant dense<0.000000e+00> : vector<2x128xf32>
    %209 = tpu.matmul %207, %208, %cst_68 {dimension_numbers = #tpu.dot_dimension_numbers<[1], [0], [0], [1], [0, 0, 1, 1], [], []>} : vector<2x32xf32>, vector<32x128xf32>, vector<2x128xf32> -> vector<2x128xf32>
    %c0_69 = arith.constant 0 : index
    %c0_70 = arith.constant 0 : index
    %210 = vector.load %arg3[%c0_69, %c0_70] : memref<32x128xf32, #tpu.memory_space<vmem>>, vector<32x128xf32>
    %cst_71 = arith.constant dense<0.000000e+00> : vector<2x128xf32>
    %211 = tpu.matmul %188, %210, %cst_71 {dimension_numbers = #tpu.dot_dimension_numbers<[1], [0], [0], [1], [0, 0, 1, 1], [], []>} : vector<2x32xf32>, vector<32x128xf32>, vector<2x128xf32> -> vector<2x128xf32>
    %212 = arith.addf %209, %211 : vector<2x128xf32>
    %213 = arith.addf %212, %16 : vector<2x128xf32>
    %214 = vector.extract_strided_slice %213 {offsets = [0, 0], sizes = [2, 96], strides = [1, 1]} : vector<2x128xf32> to vector<2x96xf32>
    %215 = arith.negf %214 : vector<2x96xf32>
    %216 = math.exp %215 : vector<2x96xf32>
    %cst_72 = arith.constant 1.000000e+00 : f32
    %217 = vector.broadcast %cst_72 : f32 to vector<2x96xf32>
    %218 = arith.addf %217, %216 : vector<2x96xf32>
    %219 = arith.divf %217, %218 : vector<2x96xf32>
    %220 = vector.extract_strided_slice %213 {offsets = [0, 96], sizes = [2, 32], strides = [1, 1]} : vector<2x128xf32> to vector<2x32xf32>
    %221 = math.tanh %220 : vector<2x32xf32>
    %222 = vector.extract_strided_slice %219 {offsets = [0, 0], sizes = [2, 32], strides = [1, 1]} : vector<2x96xf32> to vector<2x32xf32>
    %223 = vector.extract_strided_slice %219 {offsets = [0, 32], sizes = [2, 32], strides = [1, 1]} : vector<2x96xf32> to vector<2x32xf32>
    %224 = vector.extract_strided_slice %219 {offsets = [0, 64], sizes = [2, 32], strides = [1, 1]} : vector<2x96xf32> to vector<2x32xf32>
    %225 = arith.mulf %223, %186 : vector<2x32xf32>
    %226 = arith.mulf %222, %221 : vector<2x32xf32>
    %227 = arith.addf %225, %226 : vector<2x32xf32>
    %228 = math.tanh %227 : vector<2x32xf32>
    %229 = arith.mulf %224, %228 : vector<2x32xf32>
    %c0_73 = arith.constant 0 : index
    %c0_74 = arith.constant 0 : index
    %230 = vector.load %arg2[%c0_73, %c0_74] : memref<32x128xf32, #tpu.memory_space<vmem>>, vector<32x128xf32>
    %cst_75 = arith.constant dense<0.000000e+00> : vector<2x128xf32>
    %231 = tpu.matmul %207, %230, %cst_75 {dimension_numbers = #tpu.dot_dimension_numbers<[1], [0], [0], [1], [0, 0, 1, 1], [], []>} : vector<2x32xf32>, vector<32x128xf32>, vector<2x128xf32> -> vector<2x128xf32>
    %232 = arith.addf %11, %231 : vector<2x128xf32>
    %233 = vector.extract_strided_slice %232 {offsets = [0, 0], sizes = [2, 96], strides = [1, 1]} : vector<2x128xf32> to vector<2x96xf32>
    %234 = arith.negf %233 : vector<2x96xf32>
    %235 = math.exp %234 : vector<2x96xf32>
    %cst_76 = arith.constant 1.000000e+00 : f32
    %236 = vector.broadcast %cst_76 : f32 to vector<2x96xf32>
    %237 = arith.addf %236, %235 : vector<2x96xf32>
    %238 = arith.divf %236, %237 : vector<2x96xf32>
    %239 = vector.extract_strided_slice %232 {offsets = [0, 96], sizes = [2, 32], strides = [1, 1]} : vector<2x128xf32> to vector<2x32xf32>
    %240 = math.tanh %239 : vector<2x32xf32>
    %241 = vector.extract_strided_slice %238 {offsets = [0, 0], sizes = [2, 32], strides = [1, 1]} : vector<2x96xf32> to vector<2x32xf32>
    %242 = vector.extract_strided_slice %238 {offsets = [0, 32], sizes = [2, 32], strides = [1, 1]} : vector<2x96xf32> to vector<2x32xf32>
    %243 = vector.extract_strided_slice %238 {offsets = [0, 64], sizes = [2, 32], strides = [1, 1]} : vector<2x96xf32> to vector<2x32xf32>
    %244 = arith.mulf %242, %205 : vector<2x32xf32>
    %245 = arith.mulf %241, %240 : vector<2x32xf32>
    %246 = arith.addf %244, %245 : vector<2x32xf32>
    %247 = math.tanh %246 : vector<2x32xf32>
    %248 = arith.mulf %243, %247 : vector<2x32xf32>
    %c0_77 = arith.constant 0 : index
    %c0_78 = arith.constant 0 : index
    %249 = vector.load %arg4[%c0_77, %c0_78] : memref<32x128xf32, #tpu.memory_space<vmem>>, vector<32x128xf32>
    %cst_79 = arith.constant dense<0.000000e+00> : vector<2x128xf32>
    %250 = tpu.matmul %248, %249, %cst_79 {dimension_numbers = #tpu.dot_dimension_numbers<[1], [0], [0], [1], [0, 0, 1, 1], [], []>} : vector<2x32xf32>, vector<32x128xf32>, vector<2x128xf32> -> vector<2x128xf32>
    %c0_80 = arith.constant 0 : index
    %c0_81 = arith.constant 0 : index
    %251 = vector.load %arg3[%c0_80, %c0_81] : memref<32x128xf32, #tpu.memory_space<vmem>>, vector<32x128xf32>
    %cst_82 = arith.constant dense<0.000000e+00> : vector<2x128xf32>
    %252 = tpu.matmul %229, %251, %cst_82 {dimension_numbers = #tpu.dot_dimension_numbers<[1], [0], [0], [1], [0, 0, 1, 1], [], []>} : vector<2x32xf32>, vector<32x128xf32>, vector<2x128xf32> -> vector<2x128xf32>
    %253 = arith.addf %250, %252 : vector<2x128xf32>
    %254 = arith.addf %253, %16 : vector<2x128xf32>
    %255 = vector.extract_strided_slice %254 {offsets = [0, 0], sizes = [2, 96], strides = [1, 1]} : vector<2x128xf32> to vector<2x96xf32>
    %256 = arith.negf %255 : vector<2x96xf32>
    %257 = math.exp %256 : vector<2x96xf32>
    %cst_83 = arith.constant 1.000000e+00 : f32
    %258 = vector.broadcast %cst_83 : f32 to vector<2x96xf32>
    %259 = arith.addf %258, %257 : vector<2x96xf32>
    %260 = arith.divf %258, %259 : vector<2x96xf32>
    %261 = vector.extract_strided_slice %254 {offsets = [0, 96], sizes = [2, 32], strides = [1, 1]} : vector<2x128xf32> to vector<2x32xf32>
    %262 = math.tanh %261 : vector<2x32xf32>
    %263 = vector.extract_strided_slice %260 {offsets = [0, 0], sizes = [2, 32], strides = [1, 1]} : vector<2x96xf32> to vector<2x32xf32>
    %264 = vector.extract_strided_slice %260 {offsets = [0, 32], sizes = [2, 32], strides = [1, 1]} : vector<2x96xf32> to vector<2x32xf32>
    %265 = vector.extract_strided_slice %260 {offsets = [0, 64], sizes = [2, 32], strides = [1, 1]} : vector<2x96xf32> to vector<2x32xf32>
    %266 = arith.mulf %264, %227 : vector<2x32xf32>
    %267 = arith.mulf %263, %262 : vector<2x32xf32>
    %268 = arith.addf %266, %267 : vector<2x32xf32>
    %269 = math.tanh %268 : vector<2x32xf32>
    %270 = arith.mulf %265, %269 : vector<2x32xf32>
    %c0_84 = arith.constant 0 : index
    %c0_85 = arith.constant 0 : index
    %271 = vector.load %arg2[%c0_84, %c0_85] : memref<32x128xf32, #tpu.memory_space<vmem>>, vector<32x128xf32>
    %cst_86 = arith.constant dense<0.000000e+00> : vector<2x128xf32>
    %272 = tpu.matmul %248, %271, %cst_86 {dimension_numbers = #tpu.dot_dimension_numbers<[1], [0], [0], [1], [0, 0, 1, 1], [], []>} : vector<2x32xf32>, vector<32x128xf32>, vector<2x128xf32> -> vector<2x128xf32>
    %273 = arith.addf %12, %272 : vector<2x128xf32>
    %274 = vector.extract_strided_slice %273 {offsets = [0, 0], sizes = [2, 96], strides = [1, 1]} : vector<2x128xf32> to vector<2x96xf32>
    %275 = arith.negf %274 : vector<2x96xf32>
    %276 = math.exp %275 : vector<2x96xf32>
    %cst_87 = arith.constant 1.000000e+00 : f32
    %277 = vector.broadcast %cst_87 : f32 to vector<2x96xf32>
    %278 = arith.addf %277, %276 : vector<2x96xf32>
    %279 = arith.divf %277, %278 : vector<2x96xf32>
    %280 = vector.extract_strided_slice %273 {offsets = [0, 96], sizes = [2, 32], strides = [1, 1]} : vector<2x128xf32> to vector<2x32xf32>
    %281 = math.tanh %280 : vector<2x32xf32>
    %282 = vector.extract_strided_slice %279 {offsets = [0, 0], sizes = [2, 32], strides = [1, 1]} : vector<2x96xf32> to vector<2x32xf32>
    %283 = vector.extract_strided_slice %279 {offsets = [0, 32], sizes = [2, 32], strides = [1, 1]} : vector<2x96xf32> to vector<2x32xf32>
    %284 = vector.extract_strided_slice %279 {offsets = [0, 64], sizes = [2, 32], strides = [1, 1]} : vector<2x96xf32> to vector<2x32xf32>
    %285 = arith.mulf %283, %246 : vector<2x32xf32>
    %286 = arith.mulf %282, %281 : vector<2x32xf32>
    %287 = arith.addf %285, %286 : vector<2x32xf32>
    %288 = math.tanh %287 : vector<2x32xf32>
    %289 = arith.mulf %284, %288 : vector<2x32xf32>
    %c0_88 = arith.constant 0 : index
    %c0_89 = arith.constant 0 : index
    %290 = vector.load %arg4[%c0_88, %c0_89] : memref<32x128xf32, #tpu.memory_space<vmem>>, vector<32x128xf32>
    %cst_90 = arith.constant dense<0.000000e+00> : vector<2x128xf32>
    %291 = tpu.matmul %289, %290, %cst_90 {dimension_numbers = #tpu.dot_dimension_numbers<[1], [0], [0], [1], [0, 0, 1, 1], [], []>} : vector<2x32xf32>, vector<32x128xf32>, vector<2x128xf32> -> vector<2x128xf32>
    %c0_91 = arith.constant 0 : index
    %c0_92 = arith.constant 0 : index
    %292 = vector.load %arg3[%c0_91, %c0_92] : memref<32x128xf32, #tpu.memory_space<vmem>>, vector<32x128xf32>
    %cst_93 = arith.constant dense<0.000000e+00> : vector<2x128xf32>
    %293 = tpu.matmul %270, %292, %cst_93 {dimension_numbers = #tpu.dot_dimension_numbers<[1], [0], [0], [1], [0, 0, 1, 1], [], []>} : vector<2x32xf32>, vector<32x128xf32>, vector<2x128xf32> -> vector<2x128xf32>
    %294 = arith.addf %291, %293 : vector<2x128xf32>
    %295 = arith.addf %294, %16 : vector<2x128xf32>
    %296 = vector.extract_strided_slice %295 {offsets = [0, 0], sizes = [2, 96], strides = [1, 1]} : vector<2x128xf32> to vector<2x96xf32>
    %297 = arith.negf %296 : vector<2x96xf32>
    %298 = math.exp %297 : vector<2x96xf32>
    %cst_94 = arith.constant 1.000000e+00 : f32
    %299 = vector.broadcast %cst_94 : f32 to vector<2x96xf32>
    %300 = arith.addf %299, %298 : vector<2x96xf32>
    %301 = arith.divf %299, %300 : vector<2x96xf32>
    %302 = vector.extract_strided_slice %295 {offsets = [0, 96], sizes = [2, 32], strides = [1, 1]} : vector<2x128xf32> to vector<2x32xf32>
    %303 = math.tanh %302 : vector<2x32xf32>
    %304 = vector.extract_strided_slice %301 {offsets = [0, 0], sizes = [2, 32], strides = [1, 1]} : vector<2x96xf32> to vector<2x32xf32>
    %305 = vector.extract_strided_slice %301 {offsets = [0, 32], sizes = [2, 32], strides = [1, 1]} : vector<2x96xf32> to vector<2x32xf32>
    %306 = vector.extract_strided_slice %301 {offsets = [0, 64], sizes = [2, 32], strides = [1, 1]} : vector<2x96xf32> to vector<2x32xf32>
    %307 = arith.mulf %305, %268 : vector<2x32xf32>
    %308 = arith.mulf %304, %303 : vector<2x32xf32>
    %309 = arith.addf %307, %308 : vector<2x32xf32>
    %310 = math.tanh %309 : vector<2x32xf32>
    %311 = arith.mulf %306, %310 : vector<2x32xf32>
    %c0_95 = arith.constant 0 : index
    %c0_96 = arith.constant 0 : index
    %312 = vector.load %arg2[%c0_95, %c0_96] : memref<32x128xf32, #tpu.memory_space<vmem>>, vector<32x128xf32>
    %cst_97 = arith.constant dense<0.000000e+00> : vector<2x128xf32>
    %313 = tpu.matmul %289, %312, %cst_97 {dimension_numbers = #tpu.dot_dimension_numbers<[1], [0], [0], [1], [0, 0, 1, 1], [], []>} : vector<2x32xf32>, vector<32x128xf32>, vector<2x128xf32> -> vector<2x128xf32>
    %314 = arith.addf %13, %313 : vector<2x128xf32>
    %315 = vector.extract_strided_slice %314 {offsets = [0, 0], sizes = [2, 96], strides = [1, 1]} : vector<2x128xf32> to vector<2x96xf32>
    %316 = arith.negf %315 : vector<2x96xf32>
    %317 = math.exp %316 : vector<2x96xf32>
    %cst_98 = arith.constant 1.000000e+00 : f32
    %318 = vector.broadcast %cst_98 : f32 to vector<2x96xf32>
    %319 = arith.addf %318, %317 : vector<2x96xf32>
    %320 = arith.divf %318, %319 : vector<2x96xf32>
    %321 = vector.extract_strided_slice %314 {offsets = [0, 96], sizes = [2, 32], strides = [1, 1]} : vector<2x128xf32> to vector<2x32xf32>
    %322 = math.tanh %321 : vector<2x32xf32>
    %323 = vector.extract_strided_slice %320 {offsets = [0, 0], sizes = [2, 32], strides = [1, 1]} : vector<2x96xf32> to vector<2x32xf32>
    %324 = vector.extract_strided_slice %320 {offsets = [0, 32], sizes = [2, 32], strides = [1, 1]} : vector<2x96xf32> to vector<2x32xf32>
    %325 = vector.extract_strided_slice %320 {offsets = [0, 64], sizes = [2, 32], strides = [1, 1]} : vector<2x96xf32> to vector<2x32xf32>
    %326 = arith.mulf %324, %287 : vector<2x32xf32>
    %327 = arith.mulf %323, %322 : vector<2x32xf32>
    %328 = arith.addf %326, %327 : vector<2x32xf32>
    %329 = math.tanh %328 : vector<2x32xf32>
    %330 = arith.mulf %325, %329 : vector<2x32xf32>
    %c0_99 = arith.constant 0 : index
    %c0_100 = arith.constant 0 : index
    %331 = vector.load %arg4[%c0_99, %c0_100] : memref<32x128xf32, #tpu.memory_space<vmem>>, vector<32x128xf32>
    %cst_101 = arith.constant dense<0.000000e+00> : vector<2x128xf32>
    %332 = tpu.matmul %330, %331, %cst_101 {dimension_numbers = #tpu.dot_dimension_numbers<[1], [0], [0], [1], [0, 0, 1, 1], [], []>} : vector<2x32xf32>, vector<32x128xf32>, vector<2x128xf32> -> vector<2x128xf32>
    %c0_102 = arith.constant 0 : index
    %c0_103 = arith.constant 0 : index
    %333 = vector.load %arg3[%c0_102, %c0_103] : memref<32x128xf32, #tpu.memory_space<vmem>>, vector<32x128xf32>
    %cst_104 = arith.constant dense<0.000000e+00> : vector<2x128xf32>
    %334 = tpu.matmul %311, %333, %cst_104 {dimension_numbers = #tpu.dot_dimension_numbers<[1], [0], [0], [1], [0, 0, 1, 1], [], []>} : vector<2x32xf32>, vector<32x128xf32>, vector<2x128xf32> -> vector<2x128xf32>
    %335 = arith.addf %332, %334 : vector<2x128xf32>
    %336 = arith.addf %335, %16 : vector<2x128xf32>
    %337 = vector.extract_strided_slice %336 {offsets = [0, 0], sizes = [2, 96], strides = [1, 1]} : vector<2x128xf32> to vector<2x96xf32>
    %338 = arith.negf %337 : vector<2x96xf32>
    %339 = math.exp %338 : vector<2x96xf32>
    %cst_105 = arith.constant 1.000000e+00 : f32
    %340 = vector.broadcast %cst_105 : f32 to vector<2x96xf32>
    %341 = arith.addf %340, %339 : vector<2x96xf32>
    %342 = arith.divf %340, %341 : vector<2x96xf32>
    %343 = vector.extract_strided_slice %336 {offsets = [0, 96], sizes = [2, 32], strides = [1, 1]} : vector<2x128xf32> to vector<2x32xf32>
    %344 = math.tanh %343 : vector<2x32xf32>
    %345 = vector.extract_strided_slice %342 {offsets = [0, 0], sizes = [2, 32], strides = [1, 1]} : vector<2x96xf32> to vector<2x32xf32>
    %346 = vector.extract_strided_slice %342 {offsets = [0, 32], sizes = [2, 32], strides = [1, 1]} : vector<2x96xf32> to vector<2x32xf32>
    %347 = vector.extract_strided_slice %342 {offsets = [0, 64], sizes = [2, 32], strides = [1, 1]} : vector<2x96xf32> to vector<2x32xf32>
    %348 = arith.mulf %346, %309 : vector<2x32xf32>
    %349 = arith.mulf %345, %344 : vector<2x32xf32>
    %350 = arith.addf %348, %349 : vector<2x32xf32>
    %351 = math.tanh %350 : vector<2x32xf32>
    %352 = arith.mulf %347, %351 : vector<2x32xf32>
    %353 = tpu.concatenate %65, %106, %147, %188, %229, %270, %311, %352 in 0 : vector<2x32xf32>, vector<2x32xf32>, vector<2x32xf32>, vector<2x32xf32>, vector<2x32xf32>, vector<2x32xf32>, vector<2x32xf32>, vector<2x32xf32> -> vector<16x32xf32>
    %c0_106 = arith.constant 0 : index
    %c0_107 = arith.constant 0 : index
    %354 = vector.load %arg9[%c0_106, %c0_107] : memref<32x16xf32, #tpu.memory_space<vmem>>, vector<32x16xf32>
    %cst_108 = arith.constant dense<0.000000e+00> : vector<16x16xf32>
    %355 = tpu.matmul %353, %354, %cst_108 {dimension_numbers = #tpu.dot_dimension_numbers<[1], [0], [0], [1], [0, 0, 1, 1], [], []>} : vector<16x32xf32>, vector<32x16xf32>, vector<16x16xf32> -> vector<16x16xf32>
    %c0_109 = arith.constant 0 : index
    %c0_110 = arith.constant 0 : index
    %356 = vector.load %arg10[%c0_109, %c0_110] : memref<1x16xf32, #tpu.memory_space<vmem>>, vector<1x16xf32>
    %357 = vector.broadcast %356 : vector<1x16xf32> to vector<16x16xf32>
    %358 = arith.addf %355, %357 : vector<16x16xf32>
    %c0_111 = arith.constant 0 : index
    %c0_112 = arith.constant 0 : index
    %359 = vector.load %arg11[%c0_111, %c0_112] : memref<16x16xf32, #tpu.memory_space<vmem>>, vector<16x16xf32>
    tpu.vector_store %arg11[%c0_111, %c0_112], %358 {strides = array<i32>} : memref<16x16xf32, #tpu.memory_space<vmem>>, vector<16x16xf32>,
    return
  }
}

</mosaic_0001>

<bundles_post_ra>
// kernel: tpu_custom_call.1
= control target key start
LH: loop header
LB: loop body
LE: loop exit
PB: predicated region body
PF: predicated region fallthrough
CT: control target
= control target key end

     0   :  { %16 = vsyncpa [#allocation3], 0  ;;  %s3948_s0 = inlined_call_operand.vmem [shape: f32[16,16], index: 0, kind: input, shape index: {}]   ;;  %s3949_s1 = inlined_call_operand.hbm [shape: f32[16,128], index: 1, kind: input, shape index: {}]   ;;  %s3950_s2 = inlined_call_operand.vmem [shape: f32[32,128], index: 2, kind: input, shape index: {}]   ;;  %s3951_s3 = inlined_call_operand.hbm [shape: f32[32,128], index: 3, kind: input, shape index: {}]   ;;  %s3952_s4 = inlined_call_operand.hbm [shape: f32[32,128], index: 4, kind: input, shape index: {}]   ;;  %s3953_s5 = inlined_call_operand.vmem [shape: f32[1,128], index: 5, kind: input, shape index: {}]   ;;  %s3954_s6 = inlined_call_operand.vmem [shape: f32[1,128], index: 6, kind: input, shape index: {}]   ;;  %s3955_s7 = inlined_call_operand.vmem [shape: f32[2,2,32], index: 7, kind: input, shape index: {}]   ;;  %s3956_s8 = inlined_call_operand.vmem [shape: f32[2,2,32], index: 8, kind: input, shape index: {}]   ;;  %s3957_s9 = inlined_call_operand.vmem [shape: f32[32,16], index: 9, kind: input, shape index: {}]   ;;  %s3958_s10 = inlined_call_operand.vmem [shape: f32[1,16], index: 10, kind: input, shape index: {}]   ;;  %s3959_s11 = inlined_call_operand.hbm [shape: f32[16,16], index: 11, kind: output, shape index: {}]  }
   0x1   :  { %17 = vsyncpa [#allocation6], 0 }
   0x2   :  { %18 = vsyncpa [#allocation4], 0  ;;  %s3402_s17 = smov [#allocation5]   ;;  %s3403_s19 = smov [#allocation2]  }
   0x3   :  { %s40_s18 = sshll.u32 %s3402_s17, 4  ;;  %s26_s20 = sshll.u32 %s3403_s19, 4  ;;  %s41_s18 = int_to_ptr.vmem [resolvable:$true] %s40_s18  ;;  %s3473_s20 = int_to_ptr.vmem [resolvable:$true] %s26_s20 }
   0x4   :  { %s3308_s23 = scalar_lea.hbm %s3951_s3, 512 }
   0x5   :  { %p3309_p0 = scmp.ne.s32.totalorder %s3951_s3, %s3308_s23  ;;  %p3312_p1 = scmp.lt.u32.totalorder %s3308_s23, %s3951_s3 }
   0x7   :  { %p3314_p2 = pnand %p3312_p1, %p3309_p0 }
   0x9   :  { %3317 = shalt.err (!%p3314_p2)
}
   0xa   :  { %s3318_s28 = scalar_lea.vmem %s41_s18, 512  ;;  %p3323_p4 = scmp.lt.s32.totalorder %s41_s18, %s41_s18 }
   0xb   :  { %p3319_p3 = scmp.ne.s32.totalorder %s41_s18, %s3318_s28  ;;  %p3324_p5 = scmp.lt.s32.totalorder %s3318_s28, %s3318_s28 }
   0xd   :  { %p3325_p6 = por %p3324_p5, %p3323_p4 }
   0xf   :  { %p3326_p7 = pnand %p3325_p6, %p3319_p3 }
  0x11   :  { %3329 = shalt.err (!%p3326_p7)
}
  0x12   :  { %s3404_s29 = smov 128   ;;  %s3405_s30 = smov 8  }
  0x13   :  { %46 = dma.hbm_to_vmem [thread:$0]  %s3951_s3, 512, %s41_s18, [#allocation6], %s3404_s29, %s3404_s29, %s3405_s30  }
  0x14   :  { %s3330_s16 = scalar_lea.hbm %s3949_s1, 256 }
  0x15   :  { %p3331_p8 = scmp.ne.s32.totalorder %s3949_s1, %s3330_s16  ;;  %p3334_p9 = scmp.lt.u32.totalorder %s3330_s16, %s3949_s1 }
  0x17   :  { %p3336_p10 = pnand %p3334_p9, %p3331_p8 }
  0x19   :  { %3339 = shalt.err (!%p3336_p10)
}
  0x1a   :  { %s3340_s23 = scalar_lea.vmem %s3473_s20, 256  ;;  %p3345_p12 = scmp.lt.s32.totalorder %s3473_s20, %s3473_s20 }
  0x1b   :  { %p3341_p11 = scmp.ne.s32.totalorder %s3473_s20, %s3340_s23  ;;  %p3346_p13 = scmp.lt.s32.totalorder %s3340_s23, %s3340_s23 }
  0x1d   :  { %p3347_p0 = por %p3346_p13, %p3345_p12 }
  0x1f   :  { %p3348_p1 = pnand %p3347_p0, %p3341_p11 }
  0x21   :  { %3351 = shalt.err (!%p3348_p1)
}
  0x22   :  { %32 = dma.hbm_to_vmem [thread:$0]  %s3949_s1, 256, %s3473_s20, [#allocation3], %s3404_s29, %s3404_s29, %s3405_s30  }
  0x23   :  { %s3406_s24 = smov [#allocation7]   ;;  %s3352_s28 = scalar_lea.hbm %s3952_s4, 512 }
  0x24   :  { %s52_s25 = sshll.u32 %s3406_s24, 4  ;;  %p3353_p2 = scmp.ne.s32.totalorder %s3952_s4, %s3352_s28  ;;  %s53_s25 = int_to_ptr.vmem [resolvable:$true] %s52_s25 }
  0x25   :  { %p3356_p3 = scmp.lt.u32.totalorder %s3352_s28, %s3952_s4 }
  0x27   :  { %p3358_p4 = pnand %p3356_p3, %p3353_p2 }
  0x29   :  { %3361 = shalt.err (!%p3358_p4)
}
  0x2a   :  { %s3362_s16 = scalar_lea.vmem %s53_s25, 512  ;;  %p3367_p6 = scmp.lt.s32.totalorder %s53_s25, %s53_s25 }
  0x2b   :  { %p3363_p5 = scmp.ne.s32.totalorder %s53_s25, %s3362_s16  ;;  %p3368_p7 = scmp.lt.s32.totalorder %s3362_s16, %s3362_s16 }
  0x2d   :  { %p3369_p8 = por %p3368_p7, %p3367_p6 }
  0x2f   :  { %p3370_p9 = pnand %p3369_p8, %p3363_p5 }
  0x31   :  { %3373 = shalt.err (!%p3370_p9)
}
  0x32   :  { %58 = dma.hbm_to_vmem [thread:$0]  %s3952_s4, 512, %s53_s25, [#allocation6], %s3404_s29, %s3404_s29, %s3405_s30  }
  0x33   :  { %3396 = dma.done.wait [#allocation3], 256  }
  0x34   :  { %3397 = vsyncadd [#allocation3], 4294967040 }
  0x35   :  { %3398 = dma.done.wait [#allocation6], 1024  }
  0x36   :  { %3399 = vsyncadd [#allocation6], 4294966272  ;;  %v3407_v0 = vmov 0.0|0.0   ;;  %vm3408_vm0 = vmmov 0   ;;  %v3409_v1 = vmov 0.0   ;;  %vm91_vm1 = vcmask 130048  }
  0x37   :  { %3016 = vmatprep.subr.bf16.mxu1 %v3407_v0  ;;  %2745 = vmatprep.mubr.msk.f32.mxu1 %vm3408_vm0, %v3409_v1  ;;  %v82_v2 = vld [vmem:[#allocation2] sm:$0xff]  ;;  %v83_v3 = vld [vmem:[#allocation2 + $0x8] sm:$0xff]  ;;  %v188_v9 = vld [vmem:[%s3950_s2 + $0x10] sm:$0xff]  ;;  %vm190_vm2 = vcmask 261120   ;;  %s3410_s13 = smov 32   ;;  %vm2426_vm3 = vcmask 1041408  }
  0x38   :  { %v186_v4 = vld [vmem:[%s3950_s2] sm:$0xff]  ;;  %v3012_v5 = vpack.c.bf16 %v83_v3, %v82_v2  ;;  %v187_v6 = vld [vmem:[%s3950_s2 + $0x8] sm:$0xff]  ;;  %v189_v10 = vld [vmem:[%s3950_s2 + $0x18] sm:$0xff]  ;;  %vm2428_vm4 = vcmask 1043456   ;;  %vm2430_vm5 = vcmask 1045504   ;;  %s3412_s27 = smov [#allocation8]  }
  0x39   :  { %v80_v7 = vld [vmem:[%s3948_s0] sm:$0xff]  ;;  %v3537_v8 = vpack.c.bf16 %v187_v6, %v186_v4  ;;  %v81_v11 = vld [vmem:[%s3948_s0 + $0x8] sm:$0xff]  ;;  %v3550_v12 = vpack.c.bf16 %v189_v10, %v188_v9  ;;  %v297_v34 = vld [vmem:[#allocation5] sm:$0xff]  ;;  %s2538_s28 = sshll.u32 %s3412_s27, 4  ;;  %s2539_s28 = int_to_ptr.vmem [resolvable:$true] %s2538_s28 }
  0x3a   :  { %2734 = vmatprep.mubr.msk.f32.mxu0 %vm91_vm1, %v80_v7  ;;  %3013 = vmatprep.subr.bf16.mxu0 %v3012_v5  ;;  %v180_v13 = vld [vmem:[%s3955_s7] sm:$0x3]  ;;  %v298_v35 = vld [vmem:[#allocation5 + $0x8] sm:$0xff]  ;;  %v300_v38 = vld [vmem:[#allocation5 + $0x18] sm:$0xff]  ;;  %s3374_s2 = scalar_lea.vmem %s2539_s28, 256  ;;  %p3379_p11 = scmp.lt.s32.totalorder %s2539_s28, %s2539_s28 }
  0x3b   :  { %3018 = vmatpush3.bf16.msra.mxu1 %v3537_v8  ;;  %3015 = vmatpush3.bf16.msra.mxu0 %v3012_v5  ;;  %v2551_v14 = vld [vmem:[%s3953_s5] ss:$0 sm:$0xff]  ;;  %v3582_v37 = vpack.c.bf16 %v298_v35, %v297_v34  ;;  %v293_v39 = vld [vmem:[#allocation7] sm:$0xff]  ;;  %v294_v40 = vld [vmem:[#allocation7 + $0x8] sm:$0xff]  ;;  %p3375_p10 = scmp.ne.s32.totalorder %s2539_s28, %s3374_s2  ;;  %p3380_p12 = scmp.lt.s32.totalorder %s3374_s2, %s3374_s2 }
  0x3c   :  { %3019 = vmatprep.subr.bf16.mxu1 %v3407_v0  ;;  %3022 = vmatprep.subr.bf16.mxu0 %v3407_v0  ;;  %v183_v23 = vld [vmem:[%s3956_s8] sm:$0x3]  ;;  %v296_v42 = vld [vmem:[#allocation7 + $0x18] sm:$0xff]  ;;  %v3587_v44 = vpack.c.bf16 %v294_v40, %v293_v39  ;;  %v2555_v46 = vld [vmem:[%s3955_s7 + $0x2] sm:$0x3]  ;;  %s3411_s7 = smov 64  }
  0x3d   :  { %v299_v36 = vld [vmem:[#allocation5 + $0x10] sm:$0xff]  ;;  %p3381_p13 = por %p3380_p12, %p3379_p11 }
  0x3e   :  { %2735 = vmatmul.mubr.msk.f32.vlgmr.msra.gmra.mrb[0].mxu0 %vm91_vm1, %v81_v11  ;;  %v295_v41 = vld [vmem:[#allocation7 + $0x10] sm:$0xff]  ;;  %v3585_v43 = vpack.c.bf16 %v300_v38, %v299_v36 }
  0x3f   :  { %3021 = vmatpush3.bf16.msra.mxu1 %v3550_v12  ;;  %2756 = vmatprep.mubr.msk.f32.mxu0 %vm3408_vm0, %v3409_v1  ;;  %v3591_v45 = vpack.c.bf16 %v296_v42, %v295_v41  ;;  %v3627_v53 = vld [vmem:[%s3954_s6] ss:$0 sm:$0xff]  ;;  %v2556_v2 = vld [vmem:[%s3956_s8 + $0x2] sm:$0x3]  ;;  %p3382_p0 = pnand %p3381_p13, %p3375_p10 }
  0x40   :  { %3028 = vmatprep.subr.bf16.mxu1 %v3407_v0  ;;  %3024 = vmatpush3.bf16.msra.mxu0 %v3582_v37 }
  0x41   :  { %3025 = vmatprep.subr.bf16.mxu0 %v3407_v0 }
  0x42   :  { %2746 = vmatmul.mubr.msk.f32.vlgmr.msra.gmra.mrb[0].mxu1 %vm190_vm2, %v180_v13 }
  0x43   :  { %2767 = vmatprep.mubr.msk.f32.mxu1 %vm3408_vm0, %v3409_v1  ;;  %3030 = vmatpush3.bf16.msra.mxu1 %v3587_v44 }
  0x44   :  { %3031 = vmatprep.subr.bf16.mxu1 %v3407_v0  ;;  %3027 = vmatpush3.bf16.msra.mxu0 %v3585_v43 }
  0x45   :  { %3034 = vmatprep.subr.bf16.mxu0 %v3407_v0 }
  0x47   :  { %3033 = vmatpush3.bf16.msra.mxu1 %v3591_v45  ;;  %2757 = vmatmul.mubr.msk.f32.vlgmr.msra.gmra.mrb[2].mxu0 %vm190_vm2, %v2555_v46 }
  0x48   :  { %3040 = vmatprep.subr.bf16.mxu1 %v3407_v0  ;;  %3036 = vmatpush3.bf16.msra.mxu0 %v3537_v8 }
  0x49   :  { %3037 = vmatprep.subr.bf16.mxu0 %v3407_v0  ;;  %2778 = vmatprep.mubr.msk.f32.mxu0 %vm3408_vm0, %v3409_v1 }
  0x4c   :  { %3039 = vmatpush3.bf16.msra.mxu0 %v3550_v12 }
  0x4d   :  { %3046 = vmatprep.subr.bf16.mxu0 %v3407_v0 }
 0x111   :  { %v2736_v15 = vpop.f32.mrb[0].mxu0 }
 0x112   :  { %v3568_v16 = vadd.f32 %v2736_v15, %v2551_v14  ;;  %v164_v17 = vpop.f32.mrb[1].mxu0 }
 0x113   :  { %v3570_v18 = vadd.f32 %v2551_v14, %v164_v17 }
 0x115   :  { %v260_v19 = vpop.f32.mrb[0].mxu1 }
 0x116   :  { %v264_v20 = vadd.f32 %v260_v19, %v3570_v18  ;;  %v2747_v21 = vpop.f32.mrb[1].mxu1 }
 0x118   :  { %3179 = vtanh.f32 %v264_v20  ;;  %v2558_v24 = vmul.f32 -1.442695, %v264_v20 }
 0x11a   :  { %3181 = vpow2.f32 %v2558_v24  ;;  %v370_v50 = vpop.f32.mrb[2].mxu0 }
 0x11b   :  { %v2758_v51 = vpop.f32.mrb[3].mxu0 }
 0x122   :  { %v3180_v22 = vpop.eup %3179 }
 0x123   :  { %278 = vrot.lane.b32.xlu0 %v3180_v22, %s3410_s13 }
 0x124   :  { %v3182_v25 = vpop.eup %3181 }
 0x125   :  { %v268_v26 = vadd.f32 1.0, %v3182_v25 }
 0x127   :  { %273 = vrot.lane.b32.xlu0 %v183_v23, %s3410_s13  ;;  %3183 = vrcp.f32 %v268_v26 }
 0x131   :  { %v3184_v27 = vpop.eup %3183 }
 0x195   :  { %v279_v28 = vpop.permute.xlu0 %278 }
 0x196   :  { %v281_v29 = vmul.f32 %v3184_v27, %v279_v28 }
 0x198   :  { %283 = vrot.lane.b32.xlu1 %v281_v29, %s3410_s13 }
 0x199   :  { %v274_v30 = vpop.permute.xlu0 %273 }
 0x19a   :  { %v276_v31 = vmul.f32 %v3184_v27, %v274_v30 }
 0x20a   :  { %v284_v32 = vpop.permute.xlu1 %283 }
 0x20b   :  { %v3579_v33 = vadd.f32 %v284_v32, %v276_v31 }
 0x20d   :  { %3185 = vtanh.f32 %v3579_v33  ;;  %v560_v20 = vrot.slane %v3579_v33, 6 }
 0x217   :  { %v3186_v47 = vpop.eup %3185 }
 0x218   :  { %289 = vrot.lane.b32.xlu1 %v3186_v47, %s3410_s13 }
 0x28a   :  { %v290_v48 = vpop.permute.xlu1 %289 }
 0x28b   :  { %v292_v49 = vmul.f32 %v3184_v27, %v290_v48 }
 0x28d   :  { %375 = vrot.lane.b32.xlu0 %v292_v49, %s3411_s7 }
 0x2ff   :  { %v376_v52 = vpop.permute.xlu0 %375 }
 0x300   :  { %2768 = vmatmul.mubr.msk.f32.vlgmr.msra.gmra.mrb[2].mxu1 %vm190_vm2, %v376_v52  ;;  %2779 = vmatmul.mubr.msk.f32.vlgmr.msra.gmra.mrb[4].mxu0 %vm190_vm2, %v376_v52 }
 0x301   :  { %3042 = vmatpush3.bf16.msra.mxu1 %v3582_v37  ;;  %3048 = vmatpush3.bf16.msra.mxu0 %v3587_v44 }
 0x302   :  { %3043 = vmatprep.subr.bf16.mxu1 %v3407_v0  ;;  %3049 = vmatprep.subr.bf16.mxu0 %v3407_v0 }
 0x303   :  { %2789 = vmatprep.mubr.msk.f32.mxu1 %vm3408_vm0, %v3409_v1  ;;  %2800 = vmatprep.mubr.msk.f32.mxu0 %vm3408_vm0, %v3409_v1 }
 0x305   :  { %3045 = vmatpush3.bf16.msra.mxu1 %v3585_v43  ;;  %3051 = vmatpush3.bf16.msra.mxu0 %v3591_v45 }
 0x306   :  { %3052 = vmatprep.subr.bf16.mxu1 %v3407_v0  ;;  %3058 = vmatprep.subr.bf16.mxu0 %v3407_v0 }
 0x3d3   :  { %v445_v54 = vpop.f32.mrb[2].mxu1  ;;  %v544_v55 = vpop.f32.mrb[4].mxu0 }
 0x3d4   :  { %v446_v56 = vadd.f32 %v445_v54, %v370_v50  ;;  %v549_v57 = vrot.slane %v544_v55, 6  ;;  %v2769_v58 = vpop.f32.mrb[3].mxu1  ;;  %v2780_v59 = vpop.f32.mrb[5].mxu0 }
 0x3d6   :  { %v449_v60 = vadd.f32 %v3627_v53, %v446_v56  ;;  %v551_v61 = vadd.f32 %v549_v57, %v3570_v18 }
 0x3d8   :  { %3187 = vtanh.f32 %v449_v60  ;;  %v2561_v3 = vmul.f32 -1.442695, %v449_v60  ;;  %v2563_v4 = vmul.f32 -1.442695, %v551_v61 }
 0x3d9   :  { %3189 = vtanh.f32 %v551_v61 }
 0x3da   :  { %3191 = vpow2.f32 %v2561_v3 }
 0x3db   :  { %3193 = vpow2.f32 %v2563_v4 }
 0x3e2   :  { %v3188_v62 = vpop.eup %3187 }
 0x3e3   :  { %v3190_v63 = vpop.eup %3189  ;;  %463 = vrot.lane.b32.xlu1 %v3188_v62, %s3410_s13 }
 0x3e4   :  { %564 = vrot.lane.b32.xlu0 %v3190_v63, %s3410_s13  ;;  %v3192_v5 = vpop.eup %3191 }
 0x3e5   :  { %v3194_v6 = vpop.eup %3193  ;;  %v453_v7 = vadd.f32 1.0, %v3192_v5 }
 0x3e6   :  { %v555_v9 = vadd.f32 1.0, %v3194_v6 }
 0x3e7   :  { %458 = vrot.lane.b32.xlu1 %v2556_v2, %s3410_s13  ;;  %3195 = vrcp.f32 %v453_v7 }
 0x3e8   :  { %3197 = vrcp.f32 %v555_v9 }
 0x3f1   :  { %v3196_v10 = vpop.eup %3195 }
 0x3f2   :  { %v3198_v13 = vpop.eup %3197 }
 0x3f3   :  { %v562_v22 = vmul.f32 %v3198_v13, %v560_v20 }
 0x455   :  { %v464_v11 = vpop.permute.xlu1 %463 }
 0x456   :  { %v565_v14 = vpop.permute.xlu0 %564  ;;  %v466_v15 = vmul.f32 %v3196_v10, %v464_v11 }
 0x457   :  { %v567_v17 = vmul.f32 %v3198_v13, %v565_v14 }
 0x458   :  { %468 = vrot.lane.b32.xlu0 %v466_v15, %s3410_s13 }
 0x459   :  { %569 = vrot.lane.b32.xlu1 %v567_v17, %s3410_s13  ;;  %v459_v19 = vpop.permute.xlu1 %458 }
 0x45a   :  { %v461_v21 = vmul.f32 %v3196_v10, %v459_v19 }
 0x4ca   :  { %v469_v23 = vpop.permute.xlu0 %468 }
 0x4cb   :  { %v570_v24 = vpop.permute.xlu1 %569  ;;  %v3640_v25 = vadd.f32 %v469_v23, %v461_v21 }
 0x4cc   :  { %v3642_v26 = vadd.f32 %v570_v24, %v562_v22 }
 0x4cd   :  { %3199 = vtanh.f32 %v3640_v25 }
 0x4ce   :  { %3201 = vtanh.f32 %v3642_v26  ;;  %v837_v6 = vrot.slane %v3642_v26, 6 }
 0x4d7   :  { %v3200_v27 = vpop.eup %3199 }
 0x4d8   :  { %v3202_v28 = vpop.eup %3201  ;;  %474 = vrot.lane.b32.xlu0 %v3200_v27, %s3410_s13 }
 0x4d9   :  { %575 = vrot.lane.b32.xlu1 %v3202_v28, %s3410_s13 }
 0x54a   :  { %v475_v29 = vpop.permute.xlu0 %474 }
 0x54b   :  { %v576_v30 = vpop.permute.xlu1 %575  ;;  %v3648_v31 = vmul.f32 %v3196_v10, %v475_v29 }
 0x54c   :  { %v578_v32 = vmul.f32 %v3198_v13, %v576_v30 }
 0x54d   :  { %580 = vrot.lane.b32.xlu0 %v3648_v31, %s3411_s7 }
 0x54e   :  { %v655_v33 = vrot.slane %v578_v32, 2 }
 0x550   :  { %656 = vrot.lane.b32.xlu1 %v655_v33, %s3411_s7 }
 0x5bf   :  { %v581_v34 = vpop.permute.xlu0 %580 }
 0x5c0   :  { %2790 = vmatmul.mubr.msk.f32.vlgmr.msra.gmra.mrb[4].mxu1 %vm190_vm2, %v581_v34 }
 0x5c1   :  { %3054 = vmatpush3.bf16.msra.mxu1 %v3537_v8  ;;  %2811 = vmatprep.mubr.msk.f32.mxu1 %vm3408_vm0, %v3409_v1 }
 0x5c2   :  { %v657_v35 = vpop.permute.xlu1 %656  ;;  %3055 = vmatprep.subr.bf16.mxu1 %v3407_v0 }
 0x5c3   :  { %2801 = vmatmul.mubr.msk.f32.vlgmr.msra.gmra.mrb[6].mxu0 %vm190_vm2, %v657_v35 }
 0x5c4   :  { %3060 = vmatpush3.bf16.msra.mxu0 %v3582_v37  ;;  %2822 = vmatprep.mubr.msk.f32.mxu0 %vm3408_vm0, %v3409_v1 }
 0x5c5   :  { %3057 = vmatpush3.bf16.msra.mxu1 %v3550_v12  ;;  %3061 = vmatprep.subr.bf16.mxu0 %v3407_v0 }
 0x5c6   :  { %3064 = vmatprep.subr.bf16.mxu1 %v3407_v0 }
 0x5c8   :  { %2812 = vmatmul.mubr.msk.f32.vlgmr.msra.gmra.mrb[6].mxu1 %vm190_vm2, %v657_v35  ;;  %3063 = vmatpush3.bf16.msra.mxu0 %v3585_v43 }
 0x5c9   :  { %3070 = vmatprep.subr.bf16.mxu0 %v3407_v0  ;;  %3066 = vmatpush3.bf16.msra.mxu1 %v3587_v44 }
 0x5ca   :  { %3067 = vmatprep.subr.bf16.mxu1 %v3407_v0  ;;  %2833 = vmatprep.mubr.msk.f32.mxu1 %vm3408_vm0, %v3409_v1 }
 0x5cd   :  { %3069 = vmatpush3.bf16.msra.mxu1 %v3591_v45 }
 0x5ce   :  { %3076 = vmatprep.subr.bf16.mxu1 %v3407_v0 }
 0x693   :  { %v650_v36 = vpop.f32.mrb[4].mxu1 }
 0x694   :  { %v2791_v38 = vpop.f32.mrb[5].mxu1 }
 0x696   :  { %v726_v39 = vpop.f32.mrb[6].mxu0 }
 0x697   :  { %v727_v40 = vadd.f32 %v726_v39, %v650_v36  ;;  %v2802_v41 = vpop.f32.mrb[7].mxu0 }
 0x699   :  { %v730_v42 = vadd.f32 %v3627_v53, %v727_v40 }
 0x69b   :  { %3203 = vtanh.f32 %v730_v42  ;;  %v821_v46 = vpop.f32.mrb[6].mxu1  ;;  %v2566_v52 = vmul.f32 -1.442695, %v730_v42 }
 0x69c   :  { %v826_v47 = vrot.slane %v821_v46, 4  ;;  %v2813_v48 = vpop.f32.mrb[7].mxu1 }
 0x69e   :  { %v828_v49 = vadd.f32 %v826_v47, %v3570_v18 }
 0x6a0   :  { %3205 = vtanh.f32 %v828_v49  ;;  %v2568_v54 = vmul.f32 -1.442695, %v828_v49 }
 0x6a1   :  { %3207 = vpow2.f32 %v2566_v52 }
 0x6a2   :  { %3209 = vpow2.f32 %v2568_v54 }
 0x6a5   :  { %v3204_v50 = vpop.eup %3203 }
 0x6a6   :  { %740 = vrot.lane.b32.xlu0 %v3204_v50, %s3410_s13 }
 0x6aa   :  { %v3206_v51 = vpop.eup %3205 }
 0x6ab   :  { %841 = vrot.lane.b32.xlu1 %v3206_v51, %s3410_s13  ;;  %v3208_v55 = vpop.eup %3207 }
 0x6ac   :  { %v734_v56 = vadd.f32 1.0, %v3208_v55  ;;  %v3210_v57 = vpop.eup %3209 }
 0x6ad   :  { %v832_v58 = vadd.f32 1.0, %v3210_v57 }
 0x6ae   :  { %3211 = vrcp.f32 %v734_v56 }
 0x6af   :  { %3213 = vrcp.f32 %v832_v58 }
 0x6b8   :  { %v3212_v59 = vpop.eup %3211 }
 0x6b9   :  { %v3214_v62 = vpop.eup %3213  ;;  %v738_v3 = vmul.f32 %v3212_v59, %v3640_v25 }
 0x6ba   :  { %v839_v7 = vmul.f32 %v3214_v62, %v837_v6 }
 0x718   :  { %v741_v60 = vpop.permute.xlu0 %740 }
 0x719   :  { %v743_v61 = vmul.f32 %v3212_v59, %v741_v60 }
 0x71b   :  { %745 = vrot.lane.b32.xlu0 %v743_v61, %s3410_s13 }
 0x71d   :  { %v842_v63 = vpop.permute.xlu1 %841 }
 0x71e   :  { %v844_v2 = vmul.f32 %v3214_v62, %v842_v63 }
 0x720   :  { %846 = vrot.lane.b32.xlu1 %v844_v2, %s3410_s13 }
 0x78d   :  { %v746_v4 = vpop.permute.xlu0 %745 }
 0x78e   :  { %v3681_v5 = vadd.f32 %v746_v4, %v738_v3 }
 0x790   :  { %3215 = vtanh.f32 %v3681_v5 }
 0x792   :  { %v847_v9 = vpop.permute.xlu1 %846 }
 0x793   :  { %v3685_v10 = vadd.f32 %v847_v9, %v839_v7 }
 0x795   :  { %3217 = vtanh.f32 %v3685_v10  ;;  %v1114_v51 = vrot.slane %v3685_v10, 6 }
 0x79a   :  { %v3216_v11 = vpop.eup %3215 }
 0x79b   :  { %751 = vrot.lane.b32.xlu0 %v3216_v11, %s3410_s13 }
 0x79f   :  { %v3218_v13 = vpop.eup %3217 }
 0x7a0   :  { %852 = vrot.lane.b32.xlu1 %v3218_v13, %s3410_s13 }
 0x80d   :  { %v752_v14 = vpop.permute.xlu0 %751 }
 0x80e   :  { %v3690_v15 = vmul.f32 %v3212_v59, %v752_v14 }
 0x810   :  { %857 = vrot.lane.b32.xlu0 %v3690_v15, %s3411_s7  ;;  %v2413_v61 = vrot.slane %v3690_v15, 6 }
 0x812   :  { %v853_v17 = vpop.permute.xlu1 %852  ;;  %v2427_v6 = vsel %vm2426_vm3, %v3648_v31, %v2413_v61 }
 0x813   :  { %v855_v19 = vmul.f32 %v3214_v62, %v853_v17 }
 0x815   :  { %v932_v20 = vrot.slane %v855_v19, 4 }
 0x817   :  { %933 = vrot.lane.b32.xlu1 %v932_v20, %s3411_s7 }
 0x882   :  { %v858_v21 = vpop.permute.xlu0 %857 }
 0x883   :  { %2823 = vmatmul.mubr.msk.f32.vlgmr.msra.gmra.mrb[8].mxu0 %vm190_vm2, %v858_v21 }
 0x884   :  { %3072 = vmatpush3.bf16.msra.mxu0 %v3537_v8  ;;  %2844 = vmatprep.mubr.msk.f32.mxu0 %vm3408_vm0, %v3409_v1 }
 0x885   :  { %3073 = vmatprep.subr.bf16.mxu0 %v3407_v0 }
 0x888   :  { %3075 = vmatpush3.bf16.msra.mxu0 %v3550_v12 }
 0x889   :  { %v934_v22 = vpop.permute.xlu1 %933  ;;  %3082 = vmatprep.subr.bf16.mxu0 %v3407_v0 }
 0x88a   :  { %2834 = vmatmul.mubr.msk.f32.vlgmr.msra.gmra.mrb[8].mxu1 %vm190_vm2, %v934_v22 }
 0x88b   :  { %2845 = vmatmul.mubr.msk.f32.vlgmr.msra.gmra.mrb[10].mxu0 %vm190_vm2, %v934_v22  ;;  %3078 = vmatpush3.bf16.msra.mxu1 %v3582_v37 }
 0x88c   :  { %3079 = vmatprep.subr.bf16.mxu1 %v3407_v0  ;;  %3084 = vmatpush3.bf16.msra.mxu0 %v3587_v44 }
 0x88d   :  { %3085 = vmatprep.subr.bf16.mxu0 %v3407_v0  ;;  %2855 = vmatprep.mubr.msk.f32.mxu1 %vm3408_vm0, %v3409_v1 }
 0x88e   :  { %2866 = vmatprep.mubr.msk.f32.mxu0 %vm3408_vm0, %v3409_v1 }
 0x88f   :  { %3081 = vmatpush3.bf16.msra.mxu1 %v3585_v43 }
 0x890   :  { %3087 = vmatpush3.bf16.msra.mxu0 %v3591_v45  ;;  %3088 = vmatprep.subr.bf16.mxu1 %v3407_v0 }
 0x891   :  { %3094 = vmatprep.subr.bf16.mxu0 %v3407_v0 }
 0x956   :  { %v927_v23 = vpop.f32.mrb[8].mxu0 }
 0x957   :  { %v2824_v24 = vpop.f32.mrb[9].mxu0 }
 0x95d   :  { %v1003_v25 = vpop.f32.mrb[8].mxu1 }
 0x95e   :  { %v1004_v26 = vadd.f32 %v1003_v25, %v927_v23  ;;  %v1098_v27 = vpop.f32.mrb[10].mxu0  ;;  %v2835_v28 = vpop.f32.mrb[9].mxu1 }
 0x95f   :  { %v1103_v29 = vrot.slane %v1098_v27, 2  ;;  %v2846_v30 = vpop.f32.mrb[11].mxu0 }
 0x960   :  { %v1007_v32 = vadd.f32 %v3627_v53, %v1004_v26 }
 0x961   :  { %v1105_v33 = vadd.f32 %v1103_v29, %v3570_v18 }
 0x962   :  { %3219 = vtanh.f32 %v1007_v32  ;;  %v2571_v36 = vmul.f32 -1.442695, %v1007_v32 }
 0x963   :  { %3221 = vtanh.f32 %v1105_v33  ;;  %v2573_v38 = vmul.f32 -1.442695, %v1105_v33 }
 0x964   :  { %3223 = vpow2.f32 %v2571_v36 }
 0x965   :  { %3225 = vpow2.f32 %v2573_v38 }
 0x96c   :  { %v3220_v34 = vpop.eup %3219 }
 0x96d   :  { %v3222_v35 = vpop.eup %3221  ;;  %1017 = vrot.lane.b32.xlu1 %v3220_v34, %s3410_s13 }
 0x96e   :  { %1118 = vrot.lane.b32.xlu0 %v3222_v35, %s3410_s13  ;;  %v3224_v39 = vpop.eup %3223 }
 0x96f   :  { %v3226_v40 = vpop.eup %3225  ;;  %v1011_v41 = vadd.f32 1.0, %v3224_v39 }
 0x970   :  { %v1109_v42 = vadd.f32 1.0, %v3226_v40 }
 0x971   :  { %3227 = vrcp.f32 %v1011_v41 }
 0x972   :  { %3229 = vrcp.f32 %v1109_v42 }
 0x97b   :  { %v3228_v46 = vpop.eup %3227 }
 0x97c   :  { %v3230_v47 = vpop.eup %3229  ;;  %v1015_v52 = vmul.f32 %v3228_v46, %v3681_v5 }
 0x97d   :  { %v1116_v54 = vmul.f32 %v3230_v47, %v1114_v51 }
 0x9df   :  { %v1018_v18 = vpop.permute.xlu1 %1017 }
 0x9e0   :  { %v1119_v48 = vpop.permute.xlu0 %1118  ;;  %v1020_v49 = vmul.f32 %v3228_v46, %v1018_v18 }
 0x9e1   :  { %v1121_v50 = vmul.f32 %v3230_v47, %v1119_v48 }
 0x9e2   :  { %1022 = vrot.lane.b32.xlu1 %v1020_v49, %s3410_s13 }
 0x9e3   :  { %1123 = vrot.lane.b32.xlu0 %v1121_v50, %s3410_s13 }
 0xa54   :  { %v1023_v55 = vpop.permute.xlu1 %1022 }
 0xa55   :  { %v1124_v56 = vpop.permute.xlu0 %1123  ;;  %v3724_v57 = vadd.f32 %v1023_v55, %v1015_v52 }
 0xa56   :  { %v3726_v58 = vadd.f32 %v1124_v56, %v1116_v54 }
 0xa57   :  { %3231 = vtanh.f32 %v3724_v57 }
 0xa58   :  { %3233 = vtanh.f32 %v3726_v58  ;;  %v1388_v39 = vrot.slane %v3726_v58, 6 }
 0xa61   :  { %v3232_v59 = vpop.eup %3231 }
 0xa62   :  { %v3234_v60 = vpop.eup %3233  ;;  %1028 = vrot.lane.b32.xlu1 %v3232_v59, %s3410_s13 }
 0xa63   :  { %1129 = vrot.lane.b32.xlu0 %v3234_v60, %s3410_s13 }
 0xad4   :  { %v1029_v62 = vpop.permute.xlu1 %1028 }
 0xad5   :  { %v1130_v63 = vpop.permute.xlu0 %1129  ;;  %v1031_v2 = vmul.f32 %v3228_v46, %v1029_v62 }
 0xad6   :  { %v1132_v3 = vmul.f32 %v3230_v47, %v1130_v63 }
 0xad7   :  { %v2415_v4 = vrot.slane %v1031_v2, 4  ;;  %1134 = vrot.lane.b32.xlu0 %v1031_v2, %s3411_s7 }
 0xad8   :  { %v1209_v5 = vrot.slane %v1132_v3, 6 }
 0xad9   :  { %v3737_v7 = vsel %vm2428_vm4, %v2427_v6, %v2415_v4 }
 0xada   :  { %1210 = vrot.lane.b32.xlu1 %v1209_v5, %s3411_s7 }
 0xb49   :  { %v1135_v9 = vpop.permute.xlu0 %1134 }
 0xb4a   :  { %2856 = vmatmul.mubr.msk.f32.vlgmr.msra.gmra.mrb[10].mxu1 %vm190_vm2, %v1135_v9 }
 0xb4b   :  { %3090 = vmatpush3.bf16.msra.mxu1 %v3537_v8  ;;  %2877 = vmatprep.mubr.msk.f32.mxu1 %vm3408_vm0, %v3409_v1 }
 0xb4c   :  { %v1211_v10 = vpop.permute.xlu1 %1210  ;;  %3091 = vmatprep.subr.bf16.mxu1 %v3407_v0 }
 0xb4d   :  { %2867 = vmatmul.mubr.msk.f32.vlgmr.msra.gmra.mrb[12].mxu0 %vm190_vm2, %v1211_v10 }
 0xb4e   :  { %3096 = vmatpush3.bf16.msra.mxu0 %v3582_v37  ;;  %2888 = vmatprep.mubr.msk.f32.mxu0 %vm3408_vm0, %v3409_v1 }
 0xb4f   :  { %3093 = vmatpush3.bf16.msra.mxu1 %v3550_v12  ;;  %3097 = vmatprep.subr.bf16.mxu0 %v3407_v0 }
 0xb50   :  { %3100 = vmatprep.subr.bf16.mxu1 %v3407_v0 }
 0xb52   :  { %2878 = vmatmul.mubr.msk.f32.vlgmr.msra.gmra.mrb[12].mxu1 %vm190_vm2, %v1211_v10  ;;  %3099 = vmatpush3.bf16.msra.mxu0 %v3585_v43 }
 0xb53   :  { %3102 = vmatpush3.bf16.msra.mxu1 %v3587_v44  ;;  %3106 = vmatprep.subr.bf16.mxu0 %v3407_v0 }
 0xb54   :  { %3103 = vmatprep.subr.bf16.mxu1 %v3407_v0  ;;  %2899 = vmatprep.mubr.msk.f32.mxu1 %vm3408_vm0, %v3409_v1 }
 0xb57   :  { %3105 = vmatpush3.bf16.msra.mxu1 %v3591_v45 }
 0xb58   :  { %3112 = vmatprep.subr.bf16.mxu1 %v3407_v0 }
 0xc1d   :  { %v1204_v31 = vpop.f32.mrb[10].mxu1 }
 0xc1e   :  { %v2857_v11 = vpop.f32.mrb[11].mxu1 }
 0xc20   :  { %v1280_v13 = vpop.f32.mrb[12].mxu0 }
 0xc21   :  { %v1281_v14 = vadd.f32 %v1280_v13, %v1204_v31  ;;  %v2868_v15 = vpop.f32.mrb[13].mxu0 }
 0xc23   :  { %v1284_v17 = vadd.f32 %v3627_v53, %v1281_v14 }
 0xc25   :  { %3235 = vtanh.f32 %v1284_v17  ;;  %v1375_v19 = vpop.f32.mrb[12].mxu1  ;;  %v2576_v24 = vmul.f32 -1.442695, %v1284_v17 }
 0xc26   :  { %v1379_v20 = vadd.f32 %v1375_v19, %v3568_v16  ;;  %v2879_v21 = vpop.f32.mrb[13].mxu1 }
 0xc28   :  { %3237 = vtanh.f32 %v1379_v20  ;;  %v2578_v25 = vmul.f32 -1.442695, %v1379_v20 }
 0xc29   :  { %3239 = vpow2.f32 %v2576_v24 }
 0xc2a   :  { %3241 = vpow2.f32 %v2578_v25 }
 0xc2f   :  { %v3236_v22 = vpop.eup %3235 }
 0xc30   :  { %1294 = vrot.lane.b32.xlu0 %v3236_v22, %s3410_s13 }
 0xc32   :  { %v3238_v23 = vpop.eup %3237 }
 0xc33   :  { %1392 = vrot.lane.b32.xlu1 %v3238_v23, %s3410_s13  ;;  %v3240_v26 = vpop.eup %3239 }
 0xc34   :  { %v3242_v27 = vpop.eup %3241  ;;  %v1288_v28 = vadd.f32 1.0, %v3240_v26 }
 0xc35   :  { %v1383_v29 = vadd.f32 1.0, %v3242_v27 }
 0xc36   :  { %3243 = vrcp.f32 %v1288_v28 }
 0xc37   :  { %3245 = vrcp.f32 %v1383_v29 }
 0xc40   :  { %v3244_v30 = vpop.eup %3243 }
 0xc41   :  { %v3246_v34 = vpop.eup %3245  ;;  %v1292_v38 = vmul.f32 %v3244_v30, %v3724_v57 }
 0xc42   :  { %v1390_v42 = vmul.f32 %v3246_v34, %v1388_v39 }
 0xca2   :  { %v1295_v32 = vpop.permute.xlu0 %1294 }
 0xca3   :  { %v1297_v33 = vmul.f32 %v3244_v30, %v1295_v32 }
 0xca5   :  { %1299 = vrot.lane.b32.xlu0 %v1297_v33, %s3410_s13  ;;  %v1393_v35 = vpop.permute.xlu1 %1392 }
 0xca6   :  { %v1395_v36 = vmul.f32 %v3246_v34, %v1393_v35 }
 0xca8   :  { %1397 = vrot.lane.b32.xlu1 %v1395_v36, %s3410_s13 }
 0xd17   :  { %v1300_v40 = vpop.permute.xlu0 %1299 }
 0xd18   :  { %v3769_v41 = vadd.f32 %v1300_v40, %v1292_v38 }
 0xd1a   :  { %3247 = vtanh.f32 %v3769_v41  ;;  %v1398_v46 = vpop.permute.xlu1 %1397 }
 0xd1b   :  { %v3772_v18 = vadd.f32 %v1398_v46, %v1390_v42 }
 0xd1d   :  { %3249 = vtanh.f32 %v3772_v18  ;;  %v1664_v26 = vrot.slane %v3772_v18, 6 }
 0xd24   :  { %v3248_v47 = vpop.eup %3247 }
 0xd25   :  { %1305 = vrot.lane.b32.xlu0 %v3248_v47, %s3410_s13 }
 0xd27   :  { %v3250_v48 = vpop.eup %3249 }
 0xd28   :  { %1403 = vrot.lane.b32.xlu1 %v3250_v48, %s3410_s13 }
 0xd97   :  { %v1306_v49 = vpop.permute.xlu0 %1305 }
 0xd98   :  { %v1308_v50 = vmul.f32 %v3244_v30, %v1306_v49 }
 0xd9a   :  { %v2417_v51 = vrot.slane %v1308_v50, 2  ;;  %1408 = vrot.lane.b32.xlu0 %v1308_v50, %s3411_s7  ;;  %v1404_v52 = vpop.permute.xlu1 %1403 }
 0xd9b   :  { %v1406_v54 = vmul.f32 %v3246_v34, %v1404_v52 }
 0xd9c   :  { %v3780_v55 = vsel %vm2430_vm5, %v3737_v7, %v2417_v51 }
 0xd9d   :  { %1483 = vrot.lane.b32.xlu1 %v1406_v54, %s3411_s7 }
 0xe0c   :  { %v1409_v56 = vpop.permute.xlu0 %1408 }
 0xe0d   :  { %2889 = vmatmul.mubr.msk.f32.vlgmr.msra.gmra.mrb[14].mxu0 %vm190_vm2, %v1409_v56 }
 0xe0e   :  { %3108 = vmatpush3.bf16.msra.mxu0 %v3537_v8  ;;  %2910 = vmatprep.mubr.msk.f32.mxu0 %vm3408_vm0, %v3409_v1 }
 0xe0f   :  { %v1484_v57 = vpop.permute.xlu1 %1483  ;;  %3109 = vmatprep.subr.bf16.mxu0 %v3407_v0 }
 0xe10   :  { %2900 = vmatmul.mubr.msk.f32.vlgmr.msra.gmra.mrb[14].mxu1 %vm190_vm2, %v1484_v57 }
 0xe11   :  { %3114 = vmatpush3.bf16.msra.mxu1 %v3582_v37  ;;  %2921 = vmatprep.mubr.msk.f32.mxu1 %vm3408_vm0, %v3409_v1 }
 0xe12   :  { %3111 = vmatpush3.bf16.msra.mxu0 %v3550_v12  ;;  %3115 = vmatprep.subr.bf16.mxu1 %v3407_v0 }
 0xe13   :  { %3118 = vmatprep.subr.bf16.mxu0 %v3407_v0 }
 0xe15   :  { %2911 = vmatmul.mubr.msk.f32.vlgmr.msra.gmra.mrb[16].mxu0 %vm190_vm2, %v1484_v57  ;;  %3117 = vmatpush3.bf16.msra.mxu1 %v3585_v43 }
 0xe16   :  { %3120 = vmatpush3.bf16.msra.mxu0 %v3587_v44  ;;  %3124 = vmatprep.subr.bf16.mxu1 %v3407_v0 }
 0xe17   :  { %3121 = vmatprep.subr.bf16.mxu0 %v3407_v0  ;;  %2932 = vmatprep.mubr.msk.f32.mxu0 %vm3408_vm0, %v3409_v1 }
 0xe1a   :  { %3123 = vmatpush3.bf16.msra.mxu0 %v3591_v45 }
 0xe1b   :  { %3130 = vmatprep.subr.bf16.mxu0 %v3407_v0 }
 0xee0   :  { %v1478_v58 = vpop.f32.mrb[14].mxu0 }
 0xee1   :  { %v2890_v59 = vpop.f32.mrb[15].mxu0 }
 0xee3   :  { %v1553_v60 = vpop.f32.mrb[14].mxu1 }
 0xee4   :  { %v1554_v61 = vadd.f32 %v1553_v60, %v1478_v58  ;;  %v2901_v62 = vpop.f32.mrb[15].mxu1 }
 0xee6   :  { %v1557_v63 = vadd.f32 %v3627_v53, %v1554_v61 }
 0xee8   :  { %3251 = vtanh.f32 %v1557_v63  ;;  %v1648_v2 = vpop.f32.mrb[16].mxu0  ;;  %v2581_v9 = vmul.f32 -1.442695, %v1557_v63 }
 0xee9   :  { %v1653_v3 = vrot.slane %v1648_v2, 6  ;;  %v2912_v4 = vpop.f32.mrb[17].mxu0 }
 0xeeb   :  { %v1655_v5 = vadd.f32 %v1653_v3, %v3568_v16 }
 0xeed   :  { %3253 = vtanh.f32 %v1655_v5  ;;  %v2583_v10 = vmul.f32 -1.442695, %v1655_v5 }
 0xeee   :  { %3255 = vpow2.f32 %v2581_v9 }
 0xeef   :  { %3257 = vpow2.f32 %v2583_v10 }
 0xef2   :  { %v3252_v6 = vpop.eup %3251 }
 0xef3   :  { %1567 = vrot.lane.b32.xlu0 %v3252_v6, %s3410_s13 }
 0xef7   :  { %v3254_v7 = vpop.eup %3253 }
 0xef8   :  { %1668 = vrot.lane.b32.xlu1 %v3254_v7, %s3410_s13  ;;  %v3256_v31 = vpop.eup %3255 }
 0xef9   :  { %v1561_v11 = vadd.f32 1.0, %v3256_v31  ;;  %v3258_v13 = vpop.eup %3257 }
 0xefa   :  { %v1659_v14 = vadd.f32 1.0, %v3258_v13 }
 0xefb   :  { %3259 = vrcp.f32 %v1561_v11 }
 0xefc   :  { %3261 = vrcp.f32 %v1659_v14 }
 0xf05   :  { %v3260_v15 = vpop.eup %3259 }
 0xf06   :  { %v3262_v20 = vpop.eup %3261  ;;  %v1565_v23 = vmul.f32 %v3260_v15, %v3769_v41 }
 0xf07   :  { %v1666_v27 = vmul.f32 %v3262_v20, %v1664_v26 }
 0xf65   :  { %v1568_v17 = vpop.permute.xlu0 %1567 }
 0xf66   :  { %v1570_v19 = vmul.f32 %v3260_v15, %v1568_v17 }
 0xf68   :  { %1572 = vrot.lane.b32.xlu0 %v1570_v19, %s3410_s13 }
 0xf6a   :  { %v1669_v21 = vpop.permute.xlu1 %1668 }
 0xf6b   :  { %v1671_v22 = vmul.f32 %v3262_v20, %v1669_v21 }
 0xf6d   :  { %1673 = vrot.lane.b32.xlu1 %v1671_v22, %s3410_s13 }
 0xfda   :  { %v1573_v24 = vpop.permute.xlu0 %1572 }
 0xfdb   :  { %v3811_v25 = vadd.f32 %v1573_v24, %v1565_v23 }
 0xfdd   :  { %3263 = vtanh.f32 %v3811_v25 }
 0xfdf   :  { %v1674_v28 = vpop.permute.xlu1 %1673 }
 0xfe0   :  { %v3815_v29 = vadd.f32 %v1674_v28, %v1666_v27 }
 0xfe2   :  { %3265 = vtanh.f32 %v3815_v29  ;;  %v1941_v7 = vrot.slane %v3815_v29, 6 }
 0xfe7   :  { %v3264_v30 = vpop.eup %3263 }
 0xfe8   :  { %1578 = vrot.lane.b32.xlu0 %v3264_v30, %s3410_s13 }
 0xfec   :  { %v3266_v32 = vpop.eup %3265 }
 0xfed   :  { %1679 = vrot.lane.b32.xlu1 %v3266_v32, %s3410_s13 }
0x105a   :  { %v1579_v33 = vpop.permute.xlu0 %1578 }
0x105b   :  { %v3820_v34 = vmul.f32 %v3260_v15, %v1579_v33 }
0x105d   :  { %1684 = vrot.lane.b32.xlu0 %v3820_v34, %s3411_s7 }
0x105f   :  { %v1680_v35 = vpop.permute.xlu1 %1679 }
0x1060   :  { %v1682_v36 = vmul.f32 %v3262_v20, %v1680_v35 }
0x1062   :  { %v1759_v38 = vrot.slane %v1682_v36, 2 }
0x1064   :  { %1760 = vrot.lane.b32.xlu1 %v1759_v38, %s3411_s7 }
0x10cf   :  { %v1685_v39 = vpop.permute.xlu0 %1684 }
0x10d0   :  { %2922 = vmatmul.mubr.msk.f32.vlgmr.msra.gmra.mrb[16].mxu1 %vm190_vm2, %v1685_v39 }
0x10d1   :  { %3126 = vmatpush3.bf16.msra.mxu1 %v3537_v8  ;;  %2943 = vmatprep.mubr.msk.f32.mxu1 %vm3408_vm0, %v3409_v1 }
0x10d2   :  { %3127 = vmatprep.subr.bf16.mxu1 %v3407_v0 }
0x10d5   :  { %3129 = vmatpush3.bf16.msra.mxu1 %v3550_v12 }
0x10d6   :  { %v1761_v40 = vpop.permute.xlu1 %1760  ;;  %3136 = vmatprep.subr.bf16.mxu1 %v3407_v0 }
0x10d7   :  { %2933 = vmatmul.mubr.msk.f32.vlgmr.msra.gmra.mrb[18].mxu0 %vm190_vm2, %v1761_v40 }
0x10d8   :  { %2944 = vmatmul.mubr.msk.f32.vlgmr.msra.gmra.mrb[18].mxu1 %vm190_vm2, %v1761_v40  ;;  %3132 = vmatpush3.bf16.msra.mxu0 %v3582_v37 }
0x10d9   :  { %3133 = vmatprep.subr.bf16.mxu0 %v3407_v0  ;;  %3138 = vmatpush3.bf16.msra.mxu1 %v3587_v44 }
0x10da   :  { %2954 = vmatprep.mubr.msk.f32.mxu0 %vm3408_vm0, %v3409_v1  ;;  %3139 = vmatprep.subr.bf16.mxu1 %v3407_v0 }
0x10db   :  { %2965 = vmatprep.mubr.msk.f32.mxu1 %vm3408_vm0, %v3409_v1 }
0x10dc   :  { %3135 = vmatpush3.bf16.msra.mxu0 %v3585_v43 }
0x10dd   :  { %3142 = vmatprep.subr.bf16.mxu0 %v3407_v0  ;;  %3141 = vmatpush3.bf16.msra.mxu1 %v3591_v45 }
0x10de   :  { %3148 = vmatprep.subr.bf16.mxu1 %v3407_v0 }
0x11a3   :  { %v1754_v41 = vpop.f32.mrb[16].mxu1 }
0x11a4   :  { %v2923_v42 = vpop.f32.mrb[17].mxu1 }
0x11aa   :  { %v1830_v46 = vpop.f32.mrb[18].mxu0 }
0x11ab   :  { %v1831_v18 = vadd.f32 %v1830_v46, %v1754_v41  ;;  %v2934_v47 = vpop.f32.mrb[19].mxu0  ;;  %v1925_v48 = vpop.f32.mrb[18].mxu1 }
0x11ac   :  { %v1930_v49 = vrot.slane %v1925_v48, 4  ;;  %v2945_v50 = vpop.f32.mrb[19].mxu1 }
0x11ad   :  { %v1834_v51 = vadd.f32 %v3627_v53, %v1831_v18 }
0x11ae   :  { %v1932_v52 = vadd.f32 %v1930_v49, %v3568_v16 }
0x11af   :  { %3267 = vtanh.f32 %v1834_v51  ;;  %v2586_v57 = vmul.f32 -1.442695, %v1834_v51 }
0x11b0   :  { %3269 = vtanh.f32 %v1932_v52  ;;  %v2588_v58 = vmul.f32 -1.442695, %v1932_v52 }
0x11b1   :  { %3271 = vpow2.f32 %v2586_v57 }
0x11b2   :  { %3273 = vpow2.f32 %v2588_v58 }
0x11b9   :  { %v3268_v54 = vpop.eup %3267 }
0x11ba   :  { %v3270_v56 = vpop.eup %3269  ;;  %1844 = vrot.lane.b32.xlu0 %v3268_v54, %s3410_s13 }
0x11bb   :  { %1945 = vrot.lane.b32.xlu1 %v3270_v56, %s3410_s13  ;;  %v3272_v59 = vpop.eup %3271 }
0x11bc   :  { %v3274_v60 = vpop.eup %3273  ;;  %v1838_v61 = vadd.f32 1.0, %v3272_v59 }
0x11bd   :  { %v1936_v62 = vadd.f32 1.0, %v3274_v60 }
0x11be   :  { %3275 = vrcp.f32 %v1838_v61 }
0x11bf   :  { %3277 = vrcp.f32 %v1936_v62 }
0x11c8   :  { %v3276_v63 = vpop.eup %3275 }
0x11c9   :  { %v3278_v3 = vpop.eup %3277  ;;  %v1842_v9 = vmul.f32 %v3276_v63, %v3811_v25 }
0x11ca   :  { %v1943_v31 = vmul.f32 %v3278_v3, %v1941_v7 }
0x122c   :  { %v1845_v2 = vpop.permute.xlu0 %1844 }
0x122d   :  { %v1847_v4 = vmul.f32 %v3276_v63, %v1845_v2  ;;  %v1946_v5 = vpop.permute.xlu1 %1945 }
0x122e   :  { %v1948_v6 = vmul.f32 %v3278_v3, %v1946_v5 }
0x122f   :  { %1849 = vrot.lane.b32.xlu0 %v1847_v4, %s3410_s13 }
0x1230   :  { %1950 = vrot.lane.b32.xlu1 %v1948_v6, %s3410_s13 }
0x12a1   :  { %v1850_v10 = vpop.permute.xlu0 %1849 }
0x12a2   :  { %v3854_v11 = vadd.f32 %v1850_v10, %v1842_v9  ;;  %v1951_v13 = vpop.permute.xlu1 %1950 }
0x12a3   :  { %v3856_v14 = vadd.f32 %v1951_v13, %v1943_v31 }
0x12a4   :  { %3279 = vtanh.f32 %v3854_v11 }
0x12a5   :  { %3281 = vtanh.f32 %v3856_v14  ;;  %v2218_v48 = vrot.slane %v3856_v14, 6 }
0x12ae   :  { %v3280_v15 = vpop.eup %3279 }
0x12af   :  { %v3282_v17 = vpop.eup %3281  ;;  %1855 = vrot.lane.b32.xlu0 %v3280_v15, %s3410_s13 }
0x12b0   :  { %1956 = vrot.lane.b32.xlu1 %v3282_v17, %s3410_s13 }
0x1321   :  { %v1856_v19 = vpop.permute.xlu0 %1855 }
0x1322   :  { %v3862_v20 = vmul.f32 %v3276_v63, %v1856_v19  ;;  %v1957_v21 = vpop.permute.xlu1 %1956 }
0x1323   :  { %v1959_v22 = vmul.f32 %v3278_v3, %v1957_v21 }
0x1324   :  { %1961 = vrot.lane.b32.xlu0 %v3862_v20, %s3411_s7  ;;  %v2419_v56 = vrot.slane %v3862_v20, 6 }
0x1325   :  { %v2036_v23 = vrot.slane %v1959_v22, 4 }
0x1326   :  { %v2432_v60 = vsel %vm2426_vm3, %v3820_v34, %v2419_v56  ;;  %v3307_v34 = vld [vmem:[%s3954_s6] ss:$0 sm:$0xff] }
0x1327   :  { %2037 = vrot.lane.b32.xlu1 %v2036_v23, %s3411_s7 }
0x1396   :  { %v1962_v24 = vpop.permute.xlu0 %1961 }
0x1397   :  { %2955 = vmatmul.mubr.msk.f32.vlgmr.msra.gmra.mrb[20].mxu0 %vm190_vm2, %v1962_v24 }
0x1398   :  { %3144 = vmatpush3.bf16.msra.mxu0 %v3537_v8  ;;  %2976 = vmatprep.mubr.msk.f32.mxu0 %vm3408_vm0, %v3409_v1 }
0x1399   :  { %v2038_v25 = vpop.permute.xlu1 %2037  ;;  %3145 = vmatprep.subr.bf16.mxu0 %v3407_v0 }
0x139a   :  { %2966 = vmatmul.mubr.msk.f32.vlgmr.msra.gmra.mrb[20].mxu1 %vm190_vm2, %v2038_v25 }
0x139b   :  { %3150 = vmatpush3.bf16.msra.mxu1 %v3582_v37  ;;  %2987 = vmatprep.mubr.msk.f32.mxu1 %vm3408_vm0, %v3409_v1 }
0x139c   :  { %3147 = vmatpush3.bf16.msra.mxu0 %v3550_v12  ;;  %3151 = vmatprep.subr.bf16.mxu1 %v3407_v0 }
0x139d   :  { %3154 = vmatprep.subr.bf16.mxu0 %v3407_v0 }
0x139f   :  { %2977 = vmatmul.mubr.msk.f32.vlgmr.msra.gmra.mrb[22].mxu0 %vm190_vm2, %v2038_v25  ;;  %3153 = vmatpush3.bf16.msra.mxu1 %v3585_v43  ;;  %v2435_v25 = vld [vmem:[%s3957_s9] sm:$0xff] }
0x13a0   :  { %3156 = vmatpush3.bf16.msra.mxu0 %v3587_v44  ;;  %2998 = vmatprep.mubr.msk.f32.mxu0 %vm3408_vm0, %v3409_v1 }
0x13a1   :  { %3157 = vmatprep.subr.bf16.mxu0 %v3407_v0 }
0x13a4   :  { %3159 = vmatpush3.bf16.msra.mxu0 %v3591_v45 }
0x146a   :  { %v2031_v8 = vpop.f32.mrb[20].mxu0 }
0x146b   :  { %v2956_v37 = vpop.f32.mrb[21].mxu0 }
0x146c   :  { %v2437_v37 = vld [vmem:[%s3957_s9 + $0x10] sm:$0xff] }
0x146d   :  { %v2107_v12 = vpop.f32.mrb[20].mxu1 }
0x146e   :  { %v2108_v26 = vadd.f32 %v2107_v12, %v2031_v8  ;;  %v2967_v27 = vpop.f32.mrb[21].mxu1  ;;  %v2436_v8 = vld [vmem:[%s3957_s9 + $0x8] sm:$0xff]  ;;  %v2438_v12 = vld [vmem:[%s3957_s9 + $0x18] sm:$0xff] }
0x1470   :  { %v2111_v28 = vadd.f32 %v3627_v53, %v2108_v26  ;;  %v3164_v26 = vpack.c.bf16 %v2438_v12, %v2437_v37 }
0x1472   :  { %3283 = vtanh.f32 %v2111_v28  ;;  %v2202_v29 = vpop.f32.mrb[22].mxu0  ;;  %v2591_v1 = vmul.f32 -1.442695, %v2111_v28 }
0x1473   :  { %v2207_v30 = vrot.slane %v2202_v29, 2  ;;  %v2978_v43 = vpop.f32.mrb[23].mxu0 }
0x1475   :  { %v2209_v44 = vadd.f32 %v2207_v30, %v3568_v16 }
0x1477   :  { %3285 = vtanh.f32 %v2209_v44  ;;  %v2593_v45 = vmul.f32 -1.442695, %v2209_v44 }
0x1478   :  { %3287 = vpow2.f32 %v2591_v1 }
0x1479   :  { %3289 = vpow2.f32 %v2593_v45 }
0x147c   :  { %v3284_v32 = vpop.eup %3283 }
0x147d   :  { %2121 = vrot.lane.b32.xlu1 %v3284_v32, %s3410_s13  ;;  %v2597_v32 = vld [vmem:[%s3958_s10] ss:$0 sm:$0xff] }
0x1481   :  { %v3286_v0 = vpop.eup %3285 }
0x1482   :  { %2222 = vrot.lane.b32.xlu0 %v3286_v0, %s3410_s13  ;;  %v3288_v33 = vpop.eup %3287 }
0x1483   :  { %v2115_v35 = vadd.f32 1.0, %v3288_v33  ;;  %v3290_v53 = vpop.eup %3289 }
0x1484   :  { %v2213_v36 = vadd.f32 1.0, %v3290_v53 }
0x1485   :  { %3291 = vrcp.f32 %v2115_v35 }
0x1486   :  { %3293 = vrcp.f32 %v2213_v36 }
0x148f   :  { %v3292_v38 = vpop.eup %3291 }
0x1490   :  { %v3294_v40 = vpop.eup %3293  ;;  %v2119_v46 = vmul.f32 %v3292_v38, %v3854_v11 }
0x1491   :  { %v2220_v49 = vmul.f32 %v3294_v40, %v2218_v48 }
0x14ef   :  { %v2122_v39 = vpop.permute.xlu1 %2121 }
0x14f0   :  { %v2124_v16 = vmul.f32 %v3292_v38, %v2122_v39 }
0x14f2   :  { %2126 = vrot.lane.b32.xlu1 %v2124_v16, %s3410_s13 }
0x14f4   :  { %v2223_v41 = vpop.permute.xlu0 %2222 }
0x14f5   :  { %v2225_v42 = vmul.f32 %v3294_v40, %v2223_v41 }
0x14f7   :  { %2227 = vrot.lane.b32.xlu0 %v2225_v42, %s3410_s13 }
0x1564   :  { %v2127_v18 = vpop.permute.xlu1 %2126 }
0x1565   :  { %v2129_v47 = vadd.f32 %v2127_v18, %v2119_v46 }
0x1567   :  { %3295 = vtanh.f32 %v2129_v47 }
0x1569   :  { %v2228_v50 = vpop.permute.xlu0 %2227 }
0x156a   :  { %v2230_v51 = vadd.f32 %v2228_v50, %v2220_v49 }
0x156c   :  { %3297 = vtanh.f32 %v2230_v51 }
0x1571   :  { %v3296_v52 = vpop.eup %3295 }
0x1572   :  { %2132 = vrot.lane.b32.xlu1 %v3296_v52, %s3410_s13 }
0x1576   :  { %v3298_v54 = vpop.eup %3297 }
0x1577   :  { %2233 = vrot.lane.b32.xlu0 %v3298_v54, %s3410_s13 }
0x15e4   :  { %v2133_v57 = vpop.permute.xlu1 %2132 }
0x15e5   :  { %v2135_v58 = vmul.f32 %v3292_v38, %v2133_v57 }
0x15e7   :  { %v2421_v59 = vrot.slane %v2135_v58, 4  ;;  %2238 = vrot.lane.b32.xlu0 %v2135_v58, %s3411_s7 }
0x15e9   :  { %v2234_v61 = vpop.permute.xlu0 %2233  ;;  %v2433_v62 = vsel %vm2428_vm4, %v2432_v60, %v2421_v59 }
0x15ea   :  { %v2236_v63 = vmul.f32 %v3294_v40, %v2234_v61 }
0x15ec   :  { %v2313_v2 = vrot.slane %v2236_v63, 6 }
0x15ee   :  { %2314 = vrot.lane.b32.xlu1 %v2313_v2, %s3411_s7 }
0x1659   :  { %v2239_v3 = vpop.permute.xlu0 %2238 }
0x165a   :  { %2988 = vmatmul.mubr.msk.f32.vlgmr.msra.gmra.mrb[22].mxu1 %vm190_vm2, %v2239_v3 }
0x1660   :  { %v2315_v4 = vpop.permute.xlu1 %2314 }
0x1661   :  { %2999 = vmatmul.mubr.msk.f32.vlgmr.msra.gmra.mrb[24].mxu0 %vm190_vm2, %v2315_v4 }
0x172d   :  { %v2308_v5 = vpop.f32.mrb[22].mxu1 }
0x172e   :  { %v2989_v6 = vpop.f32.mrb[23].mxu1 }
0x1734   :  { %v2384_v7 = vpop.f32.mrb[24].mxu0 }
0x1735   :  { %v2385_v9 = vadd.f32 %v2384_v7, %v2308_v5  ;;  %v3000_v10 = vpop.f32.mrb[25].mxu0 }
0x1737   :  { %v2388_v31 = vadd.f32 %v3307_v34, %v2385_v9 }
0x1739   :  { %3299 = vtanh.f32 %v2388_v31  ;;  %v2596_v13 = vmul.f32 -1.442695, %v2388_v31 }
0x173b   :  { %3301 = vpow2.f32 %v2596_v13 }
0x1743   :  { %v3300_v11 = vpop.eup %3299 }
0x1744   :  { %2398 = vrot.lane.b32.xlu0 %v3300_v11, %s3410_s13 }
0x1745   :  { %v3302_v14 = vpop.eup %3301 }
0x1746   :  { %v2392_v15 = vadd.f32 1.0, %v3302_v14 }
0x1748   :  { %3303 = vrcp.f32 %v2392_v15 }
0x1752   :  { %v3304_v17 = vpop.eup %3303 }
0x1753   :  { %v2396_v21 = vmul.f32 %v3304_v17, %v2129_v47 }
0x17b6   :  { %v2399_v19 = vpop.permute.xlu0 %2398 }
0x17b7   :  { %v2401_v20 = vmul.f32 %v3304_v17, %v2399_v19 }
0x17b9   :  { %2403 = vrot.lane.b32.xlu1 %v2401_v20, %s3410_s13 }
0x17bd   :  { %2448 = vrot.lane.b32.xlu1 %v3780_v55, %s3411_s7  ;;  %v3160_v55 = vpack.c.bf16 %v2436_v8, %v2435_v25 }
0x17bf   :  { %3161 = vmatprep.subr.bf16.mxu1 %v3160_v55 }
0x17c0   :  { %3163 = vmatpush3.bf16.msra.mxu1 %v3160_v55 }
0x17c1   :  { %3165 = vmatprep.subr.bf16.mxu1 %v3164_v26 }
0x17c4   :  { %3167 = vmatpush3.bf16.msra.mxu1 %v3164_v26 }
0x182b   :  { %v2404_v22 = vpop.permute.xlu1 %2403 }
0x182c   :  { %v2406_v23 = vadd.f32 %v2404_v22, %v2396_v21 }
0x182e   :  { %3305 = vtanh.f32 %v2406_v23 }
0x182f   :  { %v2449_v24 = vpop.permute.xlu1 %2448 }
0x1830   :  { %3009 = vmatprep.mubr.msk.f32.mxu1 %vm190_vm2, %v2449_v24 }
0x1838   :  { %v3306_v27 = vpop.eup %3305 }
0x1839   :  { %2409 = vrot.lane.b32.xlu0 %v3306_v27, %s3410_s13 }
0x18ab   :  { %v2410_v28 = vpop.permute.xlu0 %2409 }
0x18ac   :  { %v2412_v29 = vmul.f32 %v3304_v17, %v2410_v28 }
0x18ae   :  { %v2424_v30 = vrot.slane %v2412_v29, 2 }
0x18b0   :  { %v2434_v43 = vsel %vm2430_vm5, %v2433_v62, %v2424_v30 }
0x18b1   :  { %2450 = vrot.lane.b32.xlu0 %v2434_v43, %s3411_s7 }
0x1923   :  { %v2451_v44 = vpop.permute.xlu0 %2450 }
0x1924   :  { %3010 = vmatmul.mubr.msk.f32.vlgmr.msra.gmra.mrb[24].mxu1 %vm190_vm2, %v2451_v44 }
0x19f7   :  { %v3011_v0 = vpop.f32.mrb[24].mxu1 }
0x19f8   :  { %v2528_v1 = vadd.f32 %v3011_v0, %v2597_v32  ;;  %v2522_v45 = vpop.f32.mrb[25].mxu1 }
0x19f9   :  { %v2523_v33 = vadd.f32 %v2597_v32, %v2522_v45 }
0x19fa   :  { %2532 = vst.msk [vmem:[#allocation8 + $0x8] sm:$0xff] %vm91_vm1, %v2528_v1 }
0x19fb   :  { %2531 = vst.msk [vmem:[#allocation8] sm:$0xff] %vm91_vm1, %v2523_v33 }
0x19fc   :  { %3385 = shalt.err (!%p3382_p0)
}
0x19fd   :  { %s3386_s12 = scalar_lea.hbm %s3959_s11, 256 }
0x19fe   :  { %p3387_p1 = scmp.ne.s32.totalorder %s3959_s11, %s3386_s12  ;;  %p3390_p2 = scmp.lt.u32.totalorder %s3386_s12, %s3959_s11 }
0x1a00   :  { %p3392_p3 = pnand %p3390_p2, %p3387_p1 }
0x1a02   :  { %3395 = shalt.err (!%p3392_p3)
}
0x1a03   :  { %2544 = dma.vmem_to_hbm [thread:$0]  %s2539_s28, 256, %s3959_s11, [#allocation4], %s3404_s29, %s3404_s29, %s3405_s30  }
0x1a04   :  { %3400 = dma.done.wait [#allocation4], 256  }
0x1a05   :  { %3401 = vsyncadd [#allocation4], 4294967040 }
0x1a06   :  { %2548 = vsyncpa [#allocation3], 1 }
0x1a07   :  { %2549 = vsyncpa [#allocation6], 1 }
0x1a08   :  { %2550 = vsyncpa [#allocation4], 1 }

</bundles_post_ra>
